<compile_context>
chip_gen: v6e
topology: v6e:2x2x1
jax: 0.10.0
libtpu: 0.0.40
codegen_flags: <defaults>
</compile_context>

<pallas_src>
import jax
import jax.numpy as jnp
from jax.experimental import pallas as pl
from jax.experimental.pallas import tpu as pltpu


# ----------------------------------------------------------------------------
# In-kernel helpers
# ----------------------------------------------------------------------------
def _nearest_up(x, sf):
    """Nearest-neighbour upsample of an (h, w, c) value by sf, in-register."""
    if sf == 1:
        return x
    h, w, c = x.shape
    # H axis: pure leading-dim broadcast + merge (lane dim untouched).
    x = jnp.broadcast_to(x[:, None, :, :], (h, sf, w, c)).reshape(h * sf, w, c)
    # W axis: sublane broadcast + merge (lane dim untouched).
    x = jnp.broadcast_to(x[:, :, None, :], (h * sf, w, sf, c)).reshape(h * sf, w * sf, c)
    return x


def _make_block_kernel(H, W, Cin, Csk, Cout, sf, row_tile):
    """Fused DecoderBlock2d kernel: upsample + concat + 2x(conv3x3+bias+relu)."""
    Ctot = Cin + Csk
    n_chunks = pl.cdiv(H, row_tile)

    def _conv_pass(src_pad_ref, w_ref, b_ref, c_in, write_row_chunk):
        # src_pad_ref: (H+2, W+2, c_in) zero-padded bf16 input
        # w_ref: (9*c_in, Cout) bf16 ; b_ref: (1, Cout) f32
        bias = b_ref[...]                                   # hoisted once per pass
        for ci in range(n_chunks):                          # static row-chunk loop
            h0 = ci * row_tile
            th = min(row_tile, H - h0)
            # Build the im2col tile once: (th*W, 9*c_in) -> single fat-K matmul.
            cols = []
            for kh in range(3):
                for kw in range(3):
                    cols.append(
                        src_pad_ref[h0 + kh:h0 + kh + th, kw:kw + W, :]
                        .reshape(th * W, c_in))
            lhs = jnp.concatenate(cols, axis=-1)            # (th*W, 9*c_in) bf16
            acc = jnp.dot(lhs, w_ref[...], preferred_element_type=jnp.float32)
            acc = jnp.maximum(acc + bias, 0.0)
            write_row_chunk(h0, th, acc)

    def body(x_ref, skip_ref, w1_ref, b1_ref, w2_ref, b2_ref, o_ref,
             xpad_ref, ypad_ref):
        # Zero the padded scratches: their borders implement 'same' padding.
        xpad_ref[...] = jnp.zeros((H + 2, W + 2, Ctot), xpad_ref.dtype)
        ypad_ref[...] = jnp.zeros((H + 2, W + 2, Cout), ypad_ref.dtype)

        # Fused nearest-upsample + skip-concat, written straight into the
        # padded VMEM scratch (no HBM intermediate, no host jnp.pad).
        x = _nearest_up(x_ref[...], sf)                     # (H, W, Cin)
        if skip_ref is not None:
            x = jnp.concatenate([x, skip_ref[...]], axis=-1)
        xpad_ref[1:H + 1, 1:W + 1, :] = x

        # conv1 -> intermediate stays in VMEM
        def write_mid(h0, th, acc):
            ypad_ref[1 + h0:1 + h0 + th, 1:W + 1, :] = (
                acc.astype(ypad_ref.dtype).reshape(th, W, Cout))
        _conv_pass(xpad_ref, w1_ref, b1_ref, Ctot, write_mid)

        # conv2 -> block output
        def write_out(h0, th, acc):
            o_ref[h0:h0 + th, :, :] = acc.astype(o_ref.dtype).reshape(th, W, Cout)
        _conv_pass(ypad_ref, w2_ref, b2_ref, Cout, write_out)

    if Csk > 0:
        def kernel(x_ref, skip_ref, w1_ref, b1_ref, w2_ref, b2_ref, o_ref,
                   xpad_ref, ypad_ref):
            body(x_ref, skip_ref, w1_ref, b1_ref, w2_ref, b2_ref, o_ref,
                 xpad_ref, ypad_ref)
    else:
        def kernel(x_ref, w1_ref, b1_ref, w2_ref, b2_ref, o_ref,
                   xpad_ref, ypad_ref):
            body(x_ref, None, w1_ref, b1_ref, w2_ref, b2_ref, o_ref,
                 xpad_ref, ypad_ref)
    return kernel


# ----------------------------------------------------------------------------
# pallas_call wrapper for one decoder block
# ----------------------------------------------------------------------------
def _pick_row_tile(H, W, Cout):
    # Keep the fp32 accumulator (rows x Cout) to ~8 vregs and M around 128-512.
    target_rows = max(128, 8192 // max(Cout, 1))
    return max(1, min(H, target_rows // max(W, 1)))


def decoder_block_2d(x_nhwc, skip_nhwc, params):
    """One fused DecoderBlock2d: returns (N, H*sf, W*sf, Cout) bf16."""
    N, Hl, Wl, Cin = x_nhwc.shape
    sf = params["sf"]
    H, W = Hl * sf, Wl * sf
    Cout = params["w1r"].shape[-1]
    Csk = 0 if skip_nhwc is None else skip_nhwc.shape[-1]
    Ctot = Cin + Csk
    row_tile = _pick_row_tile(H, W, Cout)

    kernel = _make_block_kernel(H, W, Cin, Csk, Cout, sf, row_tile)

    in_specs = [pl.BlockSpec((None, Hl, Wl, Cin), lambda n: (n, 0, 0, 0))]
    args = [x_nhwc]
    if skip_nhwc is not None:
        in_specs.append(pl.BlockSpec((None, H, W, Csk), lambda n: (n, 0, 0, 0)))
        args.append(skip_nhwc)
    in_specs += [
        pl.BlockSpec((9 * Ctot, Cout), lambda n: (0, 0)),   # w1 (im2col form)
        pl.BlockSpec((1, Cout), lambda n: (0, 0)),          # b1
        pl.BlockSpec((9 * Cout, Cout), lambda n: (0, 0)),   # w2 (im2col form)
        pl.BlockSpec((1, Cout), lambda n: (0, 0)),          # b2
    ]
    args += [params["w1r"], params["b1"], params["w2r"], params["b2"]]

    return pl.pallas_call(
        kernel,
        out_shape=jax.ShapeDtypeStruct((N, H, W, Cout), jnp.bfloat16),
        grid=(N,),
        in_specs=in_specs,
        out_specs=pl.BlockSpec((None, H, W, Cout), lambda n: (n, 0, 0, 0)),
        scratch_shapes=[
            pltpu.VMEM((H + 2, W + 2, Ctot), jnp.bfloat16),  # padded upsample+concat
            pltpu.VMEM((H + 2, W + 2, Cout), jnp.bfloat16),  # padded conv1 output
        ],
        compiler_params=pltpu.CompilerParams(
            dimension_semantics=("parallel",),
            vmem_limit_bytes=48 * 1024 * 1024,   # < 64 MiB (v7x physical), > 32 MiB default
        ),
    )(*args)


# ----------------------------------------------------------------------------
# UnetDecoder2d forward (glue: NCHW<->NHWC transposes + dtype casts)
# ----------------------------------------------------------------------------
def unet_decoder_2d(feats_nchw, block_params):
    """Mirrors UnetDecoder2d.forward: [feats[0], block0_out, ...] in NCHW (f32)."""
    feats = [jnp.transpose(f, (0, 2, 3, 1)).astype(jnp.bfloat16) for f in feats_nchw]
    x = feats[0]
    skips = feats[1:]
    res = [feats_nchw[0]]
    for i, p in enumerate(block_params):
        skip = skips[i] if i < len(skips) else None
        x = decoder_block_2d(x, skip, p)
        res.append(jnp.transpose(x, (0, 3, 1, 2)).astype(jnp.float32))
    return res


# ----------------------------------------------------------------------------
# Deterministic parameter init (shapes follow UnetDecoder2d.__init__)
# ----------------------------------------------------------------------------
def init_decoder_params(key, encoder_channels,
                        decoder_channels=(256, 128, 64, 32, 16),
                        scale_factors=(1, 2, 2, 2)):
    if len(encoder_channels) == 4:
        decoder_channels = decoder_channels[1:]
    skip_channels = list(encoder_channels[1:]) + [0]
    in_channels = [encoder_channels[0]] + list(decoder_channels[:-1])
    blocks = []
    for bi, (ic, sc, dc, sf) in enumerate(
            zip(in_channels, skip_channels, decoder_channels, scale_factors)):
        k1, k2, k3, k4 = jax.random.split(jax.random.fold_in(key, bi), 4)
        c1 = ic + sc
        w1 = (jax.random.normal(k1, (3, 3, c1, dc), jnp.float32)
              * (1.0 / (9.0 * c1)) ** 0.5).astype(jnp.bfloat16)
        b1 = 0.01 * jax.random.normal(k2, (dc,), jnp.float32)
        w2 = (jax.random.normal(k3, (3, 3, dc, dc), jnp.float32)
              * (1.0 / (9.0 * dc)) ** 0.5).astype(jnp.bfloat16)
        b2 = 0.01 * jax.random.normal(k4, (dc,), jnp.float32)
        blocks.append(dict(
            sf=sf,
            # kernel-side: bf16 weights pre-reshaped to im2col (9*Cin, Cout)
            w1r=w1.reshape(9 * c1, dc), b1=b1.reshape(1, dc),
            w2r=w2.reshape(9 * dc, dc), b2=b2.reshape(1, dc),
            # reference-side HWIO f32 copies of the SAME bf16 values
            w1_hwio=w1.astype(jnp.float32), w2_hwio=w2.astype(jnp.float32),
        ))
    return blocks


# ----------------------------------------------------------------------------
# Pure-JAX reference (for correctness check of the fused Pallas path)
# ----------------------------------------------------------------------------
def _conv3x3_relu_ref(x, w, b):
    y = jax.lax.conv_general_dilated(
        x, w, window_strides=(1, 1), padding="SAME",
        dimension_numbers=("NHWC", "HWIO", "NHWC"))
    return jnp.maximum(y + b, 0.0)


def _decoder_ref(feats_nchw, block_params):
    # f32 math; inputs rounded to bf16 once (same quantization the kernel sees).
    feats = [jnp.transpose(f, (0, 2, 3, 1)).astype(jnp.bfloat16).astype(jnp.float32)
             for f in feats_nchw]
    x = feats[0]
    skips = feats[1:]
    res = [feats_nchw[0]]
    for i, p in enumerate(block_params):
        sf = p["sf"]
        if sf > 1:
            x = jnp.repeat(jnp.repeat(x, sf, axis=1), sf, axis=2)
        if i < len(skips):
            x = jnp.concatenate([x, skips[i]], axis=-1)
        x = _conv3x3_relu_ref(x, p["w1_hwio"], p["b1"].reshape(-1))
        x = _conv3x3_relu_ref(x, p["w2_hwio"], p["b2"].reshape(-1))
        res.append(jnp.transpose(x, (0, 3, 1, 2)))
    return res


# ----------------------------------------------------------------------------
if __name__ == "__main__":
    key = jax.random.PRNGKey(0)

    # Deepest-first encoder pyramid: feats[0] = bottleneck, feats[1:] = skips
    # at increasing resolution (what UnetDecoder2d.forward implies).
    encoder_channels = (32, 24, 16, 8)
    spatials = (4, 4, 8, 16)
    N = 2

    feats_nchw = [
        jax.random.normal(jax.random.fold_in(key, 100 + i), (N, c, s, s), jnp.float32)
        for i, (c, s) in enumerate(zip(encoder_channels, spatials))
    ]
    block_params = init_decoder_params(jax.random.fold_in(key, 7), encoder_channels)

    outs = unet_decoder_2d(feats_nchw, block_params)
    for o in outs:
        jax.block_until_ready(o)

    # Validate against the pure-JAX reference (bf16 matmul path -> loose tol).
    refs = _decoder_ref(feats_nchw, block_params)
    for o, r in zip(outs, refs):
        assert o.shape == r.shape, (o.shape, r.shape)
        err = float(jnp.max(jnp.abs(o.astype(jnp.float32) - r)))
        assert err < 1e-1, f"mismatch vs reference: max abs err {err}"

    print("KERNEL_OK")
</pallas_src>

<mosaic_0001>
module attributes {stable_mosaic.version = 11 : i64} {
  func.func @kernel(%arg0: i32, %arg1: memref<1x4x4x32xbf16, #tpu.memory_space<vmem>>, %arg2: memref<1x4x4x24xbf16, #tpu.memory_space<vmem>>, %arg3: memref<504x128xbf16, #tpu.memory_space<vmem>>, %arg4: memref<1x128xf32, #tpu.memory_space<vmem>>, %arg5: memref<1152x128xbf16, #tpu.memory_space<vmem>>, %arg6: memref<1x128xf32, #tpu.memory_space<vmem>>, %arg7: memref<1x4x4x128xbf16, #tpu.memory_space<vmem>>, %arg8: memref<6x6x56xbf16, #tpu.memory_space<vmem>>, %arg9: memref<6x6x128xbf16, #tpu.memory_space<vmem>>) attributes {dimension_semantics = [#tpu.dimension_semantics<parallel>], iteration_bounds = array<i64: 2>, scalar_prefetch = 0 : i64, scratch_operands = 2 : i64, tpu.core_type = #tpu.core_type<tc>, window_params = [{transform_indices = @transform_0, window_bounds = array<i64: 1, 4, 4, 32>}, {transform_indices = @transform_1, window_bounds = array<i64: 1, 4, 4, 24>}, {pipeline_mode = #tpu.pipeline_mode<synchronous>, transform_indices = @transform_2, window_bounds = array<i64: 504, 128>}, {pipeline_mode = #tpu.pipeline_mode<synchronous>, transform_indices = @transform_3, window_bounds = array<i64: 1, 128>}, {pipeline_mode = #tpu.pipeline_mode<synchronous>, transform_indices = @transform_4, window_bounds = array<i64: 1152, 128>}, {pipeline_mode = #tpu.pipeline_mode<synchronous>, transform_indices = @transform_5, window_bounds = array<i64: 1, 128>}, {transform_indices = @transform_6, window_bounds = array<i64: 1, 4, 4, 128>}]} {
    %cst = arith.constant 0.000000e+00 : bf16
    %0 = vector.broadcast %cst : bf16 to vector<6x6x56xbf16>
    %c0 = arith.constant 0 : index
    %c0_0 = arith.constant 0 : index
    %c0_1 = arith.constant 0 : index
    %1 = vector.load %arg8[%c0, %c0_0, %c0_1] : memref<6x6x56xbf16, #tpu.memory_space<vmem>>, vector<6x6x56xbf16>
    tpu.vector_store %arg8[%c0, %c0_0, %c0_1], %0 {strides = array<i32>} : memref<6x6x56xbf16, #tpu.memory_space<vmem>>, vector<6x6x56xbf16>,
    %cst_2 = arith.constant 0.000000e+00 : bf16
    %2 = vector.broadcast %cst_2 : bf16 to vector<6x6x128xbf16>
    %c0_3 = arith.constant 0 : index
    %c0_4 = arith.constant 0 : index
    %c0_5 = arith.constant 0 : index
    %3 = vector.load %arg9[%c0_3, %c0_4, %c0_5] : memref<6x6x128xbf16, #tpu.memory_space<vmem>>, vector<6x6x128xbf16>
    tpu.vector_store %arg9[%c0_3, %c0_4, %c0_5], %2 {strides = array<i32>} : memref<6x6x128xbf16, #tpu.memory_space<vmem>>, vector<6x6x128xbf16>,
    %c0_6 = arith.constant 0 : index
    %c0_7 = arith.constant 0 : index
    %c0_8 = arith.constant 0 : index
    %c0_9 = arith.constant 0 : index
    %4 = vector.load %arg1[%c0_6, %c0_7, %c0_8, %c0_9] : memref<1x4x4x32xbf16, #tpu.memory_space<vmem>>, vector<1x4x4x32xbf16>
    %5 = vector.shape_cast %4 : vector<1x4x4x32xbf16> to vector<4x4x32xbf16>
    %c0_10 = arith.constant 0 : index
    %c0_11 = arith.constant 0 : index
    %c0_12 = arith.constant 0 : index
    %c0_13 = arith.constant 0 : index
    %6 = vector.load %arg2[%c0_10, %c0_11, %c0_12, %c0_13] : memref<1x4x4x24xbf16, #tpu.memory_space<vmem>>, vector<1x4x4x24xbf16>
    %7 = vector.shape_cast %6 : vector<1x4x4x24xbf16> to vector<4x4x24xbf16>
    %8 = tpu.concatenate %5, %7 in 2 : vector<4x4x32xbf16>, vector<4x4x24xbf16> -> vector<4x4x56xbf16>
    %c1 = arith.constant 1 : index
    %c1_14 = arith.constant 1 : index
    %c0_15 = arith.constant 0 : index
    %9 = vector.load %arg8[%c1, %c1_14, %c0_15] : memref<6x6x56xbf16, #tpu.memory_space<vmem>>, vector<4x4x56xbf16>
    tpu.vector_store %arg8[%c1, %c1_14, %c0_15], %8 {strides = array<i32>} : memref<6x6x56xbf16, #tpu.memory_space<vmem>>, vector<4x4x56xbf16>,
    %c0_16 = arith.constant 0 : index
    %c0_17 = arith.constant 0 : index
    %10 = vector.load %arg4[%c0_16, %c0_17] : memref<1x128xf32, #tpu.memory_space<vmem>>, vector<1x128xf32>
    %c0_18 = arith.constant 0 : index
    %c0_19 = arith.constant 0 : index
    %c0_20 = arith.constant 0 : index
    %11 = vector.load %arg8[%c0_18, %c0_19, %c0_20] : memref<6x6x56xbf16, #tpu.memory_space<vmem>>, vector<4x4x56xbf16>
    %12 = vector.shape_cast %11 : vector<4x4x56xbf16> to vector<16x56xbf16>
    %c0_21 = arith.constant 0 : index
    %c1_22 = arith.constant 1 : index
    %c0_23 = arith.constant 0 : index
    %13 = vector.load %arg8[%c0_21, %c1_22, %c0_23] : memref<6x6x56xbf16, #tpu.memory_space<vmem>>, vector<4x4x56xbf16>
    %14 = vector.shape_cast %13 : vector<4x4x56xbf16> to vector<16x56xbf16>
    %c0_24 = arith.constant 0 : index
    %c2 = arith.constant 2 : index
    %c0_25 = arith.constant 0 : index
    %15 = vector.load %arg8[%c0_24, %c2, %c0_25] : memref<6x6x56xbf16, #tpu.memory_space<vmem>>, vector<4x4x56xbf16>
    %16 = vector.shape_cast %15 : vector<4x4x56xbf16> to vector<16x56xbf16>
    %c1_26 = arith.constant 1 : index
    %c0_27 = arith.constant 0 : index
    %c0_28 = arith.constant 0 : index
    %17 = vector.load %arg8[%c1_26, %c0_27, %c0_28] : memref<6x6x56xbf16, #tpu.memory_space<vmem>>, vector<4x4x56xbf16>
    %18 = vector.shape_cast %17 : vector<4x4x56xbf16> to vector<16x56xbf16>
    %c1_29 = arith.constant 1 : index
    %c1_30 = arith.constant 1 : index
    %c0_31 = arith.constant 0 : index
    %19 = vector.load %arg8[%c1_29, %c1_30, %c0_31] : memref<6x6x56xbf16, #tpu.memory_space<vmem>>, vector<4x4x56xbf16>
    %20 = vector.shape_cast %19 : vector<4x4x56xbf16> to vector<16x56xbf16>
    %c1_32 = arith.constant 1 : index
    %c2_33 = arith.constant 2 : index
    %c0_34 = arith.constant 0 : index
    %21 = vector.load %arg8[%c1_32, %c2_33, %c0_34] : memref<6x6x56xbf16, #tpu.memory_space<vmem>>, vector<4x4x56xbf16>
    %22 = vector.shape_cast %21 : vector<4x4x56xbf16> to vector<16x56xbf16>
    %c2_35 = arith.constant 2 : index
    %c0_36 = arith.constant 0 : index
    %c0_37 = arith.constant 0 : index
    %23 = vector.load %arg8[%c2_35, %c0_36, %c0_37] : memref<6x6x56xbf16, #tpu.memory_space<vmem>>, vector<4x4x56xbf16>
    %24 = vector.shape_cast %23 : vector<4x4x56xbf16> to vector<16x56xbf16>
    %c2_38 = arith.constant 2 : index
    %c1_39 = arith.constant 1 : index
    %c0_40 = arith.constant 0 : index
    %25 = vector.load %arg8[%c2_38, %c1_39, %c0_40] : memref<6x6x56xbf16, #tpu.memory_space<vmem>>, vector<4x4x56xbf16>
    %26 = vector.shape_cast %25 : vector<4x4x56xbf16> to vector<16x56xbf16>
    %c2_41 = arith.constant 2 : index
    %c2_42 = arith.constant 2 : index
    %c0_43 = arith.constant 0 : index
    %27 = vector.load %arg8[%c2_41, %c2_42, %c0_43] : memref<6x6x56xbf16, #tpu.memory_space<vmem>>, vector<4x4x56xbf16>
    %28 = vector.shape_cast %27 : vector<4x4x56xbf16> to vector<16x56xbf16>
    %29 = tpu.concatenate %12, %14, %16, %18, %20, %22, %24, %26, %28 in 1 : vector<16x56xbf16>, vector<16x56xbf16>, vector<16x56xbf16>, vector<16x56xbf16>, vector<16x56xbf16>, vector<16x56xbf16>, vector<16x56xbf16>, vector<16x56xbf16>, vector<16x56xbf16> -> vector<16x504xbf16>
    %c0_44 = arith.constant 0 : index
    %c0_45 = arith.constant 0 : index
    %30 = vector.load %arg3[%c0_44, %c0_45] : memref<504x128xbf16, #tpu.memory_space<vmem>>, vector<504x128xbf16>
    %cst_46 = arith.constant dense<0.000000e+00> : vector<16x128xf32>
    %31 = tpu.matmul %29, %30, %cst_46 {dimension_numbers = #tpu.dot_dimension_numbers<[1], [0], [0], [1], [0, 0, 1, 1], [], []>} : vector<16x504xbf16>, vector<504x128xbf16>, vector<16x128xf32> -> vector<16x128xf32>
    %32 = vector.broadcast %10 : vector<1x128xf32> to vector<16x128xf32>
    %33 = arith.addf %31, %32 : vector<16x128xf32>
    %cst_47 = arith.constant 0.000000e+00 : f32
    %34 = vector.broadcast %cst_47 : f32 to vector<16x128xf32>
    %35 = arith.maximumf %33, %34 : vector<16x128xf32>
    %36 = arith.truncf %35 : vector<16x128xf32> to vector<16x128xbf16>
    %37 = vector.shape_cast %36 : vector<16x128xbf16> to vector<4x4x128xbf16>
    %c1_48 = arith.constant 1 : index
    %c1_49 = arith.constant 1 : index
    %c0_50 = arith.constant 0 : index
    %38 = vector.load %arg9[%c1_48, %c1_49, %c0_50] : memref<6x6x128xbf16, #tpu.memory_space<vmem>>, vector<4x4x128xbf16>
    tpu.vector_store %arg9[%c1_48, %c1_49, %c0_50], %37 {strides = array<i32>} : memref<6x6x128xbf16, #tpu.memory_space<vmem>>, vector<4x4x128xbf16>,
    %c0_51 = arith.constant 0 : index
    %c0_52 = arith.constant 0 : index
    %39 = vector.load %arg6[%c0_51, %c0_52] : memref<1x128xf32, #tpu.memory_space<vmem>>, vector<1x128xf32>
    %c0_53 = arith.constant 0 : index
    %c0_54 = arith.constant 0 : index
    %c0_55 = arith.constant 0 : index
    %40 = vector.load %arg9[%c0_53, %c0_54, %c0_55] : memref<6x6x128xbf16, #tpu.memory_space<vmem>>, vector<4x4x128xbf16>
    %41 = vector.shape_cast %40 : vector<4x4x128xbf16> to vector<16x128xbf16>
    %c0_56 = arith.constant 0 : index
    %c1_57 = arith.constant 1 : index
    %c0_58 = arith.constant 0 : index
    %42 = vector.load %arg9[%c0_56, %c1_57, %c0_58] : memref<6x6x128xbf16, #tpu.memory_space<vmem>>, vector<4x4x128xbf16>
    %43 = vector.shape_cast %42 : vector<4x4x128xbf16> to vector<16x128xbf16>
    %c0_59 = arith.constant 0 : index
    %c2_60 = arith.constant 2 : index
    %c0_61 = arith.constant 0 : index
    %44 = vector.load %arg9[%c0_59, %c2_60, %c0_61] : memref<6x6x128xbf16, #tpu.memory_space<vmem>>, vector<4x4x128xbf16>
    %45 = vector.shape_cast %44 : vector<4x4x128xbf16> to vector<16x128xbf16>
    %c1_62 = arith.constant 1 : index
    %c0_63 = arith.constant 0 : index
    %c0_64 = arith.constant 0 : index
    %46 = vector.load %arg9[%c1_62, %c0_63, %c0_64] : memref<6x6x128xbf16, #tpu.memory_space<vmem>>, vector<4x4x128xbf16>
    %47 = vector.shape_cast %46 : vector<4x4x128xbf16> to vector<16x128xbf16>
    %c1_65 = arith.constant 1 : index
    %c1_66 = arith.constant 1 : index
    %c0_67 = arith.constant 0 : index
    %48 = vector.load %arg9[%c1_65, %c1_66, %c0_67] : memref<6x6x128xbf16, #tpu.memory_space<vmem>>, vector<4x4x128xbf16>
    %49 = vector.shape_cast %48 : vector<4x4x128xbf16> to vector<16x128xbf16>
    %c1_68 = arith.constant 1 : index
    %c2_69 = arith.constant 2 : index
    %c0_70 = arith.constant 0 : index
    %50 = vector.load %arg9[%c1_68, %c2_69, %c0_70] : memref<6x6x128xbf16, #tpu.memory_space<vmem>>, vector<4x4x128xbf16>
    %51 = vector.shape_cast %50 : vector<4x4x128xbf16> to vector<16x128xbf16>
    %c2_71 = arith.constant 2 : index
    %c0_72 = arith.constant 0 : index
    %c0_73 = arith.constant 0 : index
    %52 = vector.load %arg9[%c2_71, %c0_72, %c0_73] : memref<6x6x128xbf16, #tpu.memory_space<vmem>>, vector<4x4x128xbf16>
    %53 = vector.shape_cast %52 : vector<4x4x128xbf16> to vector<16x128xbf16>
    %c2_74 = arith.constant 2 : index
    %c1_75 = arith.constant 1 : index
    %c0_76 = arith.constant 0 : index
    %54 = vector.load %arg9[%c2_74, %c1_75, %c0_76] : memref<6x6x128xbf16, #tpu.memory_space<vmem>>, vector<4x4x128xbf16>
    %55 = vector.shape_cast %54 : vector<4x4x128xbf16> to vector<16x128xbf16>
    %c2_77 = arith.constant 2 : index
    %c2_78 = arith.constant 2 : index
    %c0_79 = arith.constant 0 : index
    %56 = vector.load %arg9[%c2_77, %c2_78, %c0_79] : memref<6x6x128xbf16, #tpu.memory_space<vmem>>, vector<4x4x128xbf16>
    %57 = vector.shape_cast %56 : vector<4x4x128xbf16> to vector<16x128xbf16>
    %58 = tpu.concatenate %41, %43, %45, %47, %49, %51, %53, %55, %57 in 1 : vector<16x128xbf16>, vector<16x128xbf16>, vector<16x128xbf16>, vector<16x128xbf16>, vector<16x128xbf16>, vector<16x128xbf16>, vector<16x128xbf16>, vector<16x128xbf16>, vector<16x128xbf16> -> vector<16x1152xbf16>
    %c0_80 = arith.constant 0 : index
    %c0_81 = arith.constant 0 : index
    %59 = vector.load %arg5[%c0_80, %c0_81] : memref<1152x128xbf16, #tpu.memory_space<vmem>>, vector<1152x128xbf16>
    %cst_82 = arith.constant dense<0.000000e+00> : vector<16x128xf32>
    %60 = tpu.matmul %58, %59, %cst_82 {dimension_numbers = #tpu.dot_dimension_numbers<[1], [0], [0], [1], [0, 0, 1, 1], [], []>} : vector<16x1152xbf16>, vector<1152x128xbf16>, vector<16x128xf32> -> vector<16x128xf32>
    %61 = vector.broadcast %39 : vector<1x128xf32> to vector<16x128xf32>
    %62 = arith.addf %60, %61 : vector<16x128xf32>
    %cst_83 = arith.constant 0.000000e+00 : f32
    %63 = vector.broadcast %cst_83 : f32 to vector<16x128xf32>
    %64 = arith.maximumf %62, %63 : vector<16x128xf32>
    %65 = arith.truncf %64 : vector<16x128xf32> to vector<16x128xbf16>
    %66 = vector.shape_cast %65 : vector<16x128xbf16> to vector<4x4x128xbf16>
    %c0_84 = arith.constant 0 : index
    %c0_85 = arith.constant 0 : index
    %c0_86 = arith.constant 0 : index
    %c0_87 = arith.constant 0 : index
    %67 = vector.load %arg7[%c0_84, %c0_85, %c0_86, %c0_87] : memref<1x4x4x128xbf16, #tpu.memory_space<vmem>>, vector<1x4x4x128xbf16>
    %68 = vector.shape_cast %67 : vector<1x4x4x128xbf16> to vector<4x4x128xbf16>
    %69 = vector.shape_cast %66 : vector<4x4x128xbf16> to vector<1x4x4x128xbf16>
    tpu.vector_store %arg7[%c0_84, %c0_85, %c0_86, %c0_87], %69 {strides = array<i32>} : memref<1x4x4x128xbf16, #tpu.memory_space<vmem>>, vector<1x4x4x128xbf16>,
    return
  }
  func.func @transform_0(%arg0: i32) -> (i32, i32, i32, i32) {
    %c0_i32 = arith.constant 0 : i32
    %c0_i32_0 = arith.constant 0 : i32
    %c0_i32_1 = arith.constant 0 : i32
    %c0_i32_2 = arith.constant 0 : i32
    return %arg0, %c0_i32, %c0_i32_0, %c0_i32_1 : i32, i32, i32, i32
  }
  func.func @transform_1(%arg0: i32) -> (i32, i32, i32, i32) {
    %c0_i32 = arith.constant 0 : i32
    %c0_i32_0 = arith.constant 0 : i32
    %c0_i32_1 = arith.constant 0 : i32
    %c0_i32_2 = arith.constant 0 : i32
    return %arg0, %c0_i32, %c0_i32_0, %c0_i32_1 : i32, i32, i32, i32
  }
  func.func @transform_2(%arg0: i32) -> (i32, i32) {
    %c0_i32 = arith.constant 0 : i32
    %c0_i32_0 = arith.constant 0 : i32
    %c0_i32_1 = arith.constant 0 : i32
    return %c0_i32, %c0_i32_0 : i32, i32
  }
  func.func @transform_3(%arg0: i32) -> (i32, i32) {
    %c0_i32 = arith.constant 0 : i32
    %c0_i32_0 = arith.constant 0 : i32
    %c0_i32_1 = arith.constant 0 : i32
    return %c0_i32, %c0_i32_0 : i32, i32
  }
  func.func @transform_4(%arg0: i32) -> (i32, i32) {
    %c0_i32 = arith.constant 0 : i32
    %c0_i32_0 = arith.constant 0 : i32
    %c0_i32_1 = arith.constant 0 : i32
    return %c0_i32, %c0_i32_0 : i32, i32
  }
  func.func @transform_5(%arg0: i32) -> (i32, i32) {
    %c0_i32 = arith.constant 0 : i32
    %c0_i32_0 = arith.constant 0 : i32
    %c0_i32_1 = arith.constant 0 : i32
    return %c0_i32, %c0_i32_0 : i32, i32
  }
  func.func @transform_6(%arg0: i32) -> (i32, i32, i32, i32) {
    %c0_i32 = arith.constant 0 : i32
    %c0_i32_0 = arith.constant 0 : i32
    %c0_i32_1 = arith.constant 0 : i32
    %c0_i32_2 = arith.constant 0 : i32
    return %arg0, %c0_i32, %c0_i32_0, %c0_i32_1 : i32, i32, i32, i32
  }
}

</mosaic_0001>

<bundles_post_ra>
// kernel: tpu_custom_call.1
= control target key start
LH: loop header
LB: loop body
LE: loop exit
PB: predicated region body
PF: predicated region fallthrough
CT: control target
= control target key end

     0   :  { %s4555_s0 = inlined_call_operand.hbm [shape: bf16[2,4,4,32], index: 0, kind: input, shape index: {}]   ;;  %s4556_s1 = inlined_call_operand.hbm [shape: bf16[2,4,4,24], index: 1, kind: input, shape index: {}]   ;;  %s4557_s2 = inlined_call_operand.hbm [shape: bf16[504,128], index: 2, kind: input, shape index: {}]   ;;  %s4558_s3 = inlined_call_operand.vmem [shape: f32[1,128], index: 3, kind: input, shape index: {}]   ;;  %s4559_s4 = inlined_call_operand.hbm [shape: bf16[1152,128], index: 4, kind: input, shape index: {}]   ;;  %s4560_s5 = inlined_call_operand.vmem [shape: f32[1,128], index: 5, kind: input, shape index: {}]   ;;  %s4561_s6 = inlined_call_operand.hbm [shape: bf16[2,4,4,128], index: 6, kind: output, shape index: {}]  }
   0x1   :  { %4566 = sst [smem:[#allocation18_spill]] %s4555_s0 }
   0x2   :  { %4567 = sst [smem:[#allocation19_spill]] %s4557_s2 }
   0x3   :  { %4568 = sst [smem:[#allocation20_spill]] %s4559_s4 }
   0x4   :  { %11 = vsyncpa [#allocation5], 0 }
   0x5   :  { %13 = vsyncpa [#allocation5 + $0x1], 0 }
   0x6   :  { %14 = vsyncpa [#allocation8], 0 }
   0x7   :  { %16 = vsyncpa [#allocation8 + $0x1], 0 }
   0x8   :  { %17 = vsyncpa [#allocation11], 0 }
   0x9   :  { %18 = vsyncpa [#allocation6], 0 }
   0xa   :  { %20 = vsyncpa [#allocation6 + $0x1], 0  ;;  %s4039_s21 = smov 0   ;;  %s4041_s22 = smov 0  }
   0xb   :  { %s4043_s23 = smov 0   ;;  %s4045_s24 = smov 0  }
   0xc LB: > { %s4060_s25 = sadd.s32 4294967295, %s3979_s24   ;;  %s3199_s26 = sadd.s32 4294967294, %s3979_s24   ;;  %s3979_s24 = sphi %s4045_s24, %s4607_s24   ;;  %s3975_s23 = sphi %s4043_s23, %s4606_s23   ;;  %s3971_s22 = sphi %s4041_s22, %s4605_s22   ;;  %s3967_s21 = sphi %s4039_s21, %s4604_s21  }
   0xd   : > { %p46_p0 = scmp.ne.s32.totalorder %s3971_s22, %s3967_s21  ;;  %p4562_p1 = scmp.eq.s32.totalorder %s4060_s25, 0 }
   0xe   : > { %p186_p3 = scmp.eq.s32.totalorder %s3199_s26, 1  ;;  %p3200_p5 = scmp.ge.s32.totalorder %s3979_s24, 1 }
   0xf   : > { %p4069_p4 = por %p4562_p1, %p46_p0  ;;  %p193_p7 = scmp.lt.s32.totalorder %s3979_s24, 3 }
  0x10   : > { %p4074_p6 = por %p186_p3, %p46_p0  ;;  %s3981_s30 = smov [#allocation9]  }
  0x11   : > { %s4569_s27 = scalar_select %p4069_p4, 1, 0 }
  0x12   : > { %s4570_s28 = scalar_select %p4074_p6, 1, 0 }
  0x13   : > { %p4079_p8 = pnand %p3200_p5, %p193_p7  ;;  %s205_s7 = sshll.u32 %s3981_s30, 4  ;;  %s206_s7 = int_to_ptr.vmem [resolvable:$true] %s205_s7 }
  0x14   : > { %s3982_s9 = smov [#allocation10]   ;;  %s3806_s11 = scalar_lea.vmem %s206_s7, 4032 }
  0x15   : > { %p3591_p9 = pneg %p4079_p8  ;;  %s221_s10 = sshll.u32 %s3982_s9, 4  ;;  %s222_s10 = int_to_ptr.vmem [resolvable:$true] %s221_s10 }
  0x16   : > { %p3807_p13 = scmp.ne.s32.totalorder %s206_s7, %s3806_s11  ;;  %p3814_p5 = scmp.lt.s32.totalorder %s206_s7, %s206_s7 }
  0x17   : > { %p4088_p11 = pnand %p3591_p9, %p4562_p1  ;;  %p3815_p7 = scmp.lt.s32.totalorder %s3806_s11, %s3806_s11 }
  0x19   : > { %p3797_p12 = pneg %p4088_p11  ;;  %p3816_p10 = por %p3815_p7, %p3814_p5 }
  0x1b   : > { %p3809_p0 = pnand %p3807_p13, %p3797_p12 }
  0x1d   : > { %p3810_p3 = pneg %p3809_p0 }
  0x1f   : > { %p3817_p9 = pnand %p3816_p10, %p3810_p3 }
  0x21   : > { %3820 = shalt.err (!%p3817_p9)
}
  0x22   : > { %s3983_s12 = smov 64   ;;  %s3984_s13 = smov 4  }
  0x23   : > { %s4573_s2 = sld [smem:[#allocation19_spill]]  ;;  %s3832_s16 = scalar_lea.vmem %s222_s10, 9216 }
  0x24   : > { %p3833_p1 = scmp.ne.s32.totalorder %s222_s10, %s3832_s16  ;;  %p3840_p2 = scmp.lt.s32.totalorder %s222_s10, %s222_s10 }
  0x25   : > { %p3841_p6 = scmp.lt.s32.totalorder %s3832_s16, %s3832_s16 }
  0x26   : > { %p3835_p13 = pnand %p3833_p1, %p3797_p12 }
  0x27   : > { %p3842_p5 = por %p3841_p6, %p3840_p2 }
  0x28   : > { %p3836_p0 = pneg %p3835_p13 }
  0x29   : > { %3594 = dma.hbm_to_vmem [thread:$0]  (!%p4088_p11), %s4573_s2, 4032, %s206_s7, [#allocation8], %s3983_s12, %s3983_s12, %s3984_s13  }
  0x2a   : > { %p3843_p10 = pnand %p3842_p5, %p3836_p0 }
  0x2c   : > { %3846 = shalt.err (!%p3843_p10)
}
  0x2d   : > { %s4574_s4 = sld [smem:[#allocation20_spill]]  ;;  %s4111_s19 = sadd.s32 1, %s3979_s24  }
  0x2e   : > { %s33_s20 = sadd.s32 1, %s3975_s23  ;;  %s30_s26 = ssub.s32 %s3979_s24, %s4111_s19 }
  0x2f   : > { %p40_p1 = scmp.ne.s32.totalorder %s3975_s23, %s3971_s22  ;;  %p31_p2 = scmp.eq.s32.totalorder %s30_s26, 0 }
  0x30   : > { %p41_p6 = scmp.eq.s32.totalorder %s3979_s24, 0  ;;  %p4575_p12 = scmp.eq.s32.totalorder %s4060_s25, 1 }
  0x31   : > { %p3611_p7 = scmp.lt.s32.totalorder %s3979_s24, 2  ;;  %s238_s8 = sand.u32 1, %s3975_s23  }
  0x32   : > { %p4121_p3 = por %p4575_p12, %p40_p1  ;;  %p42_p9 = por %p41_p6, %p40_p1 }
  0x33   : > { %3597 = dma.hbm_to_vmem [thread:$0]  (!%p4088_p11), %s4574_s4, 9216, %s222_s10, [#allocation11], %s3983_s12, %s3983_s12, %s3984_s13  }
  0x34   : > { %s4576_s30 = scalar_select %p4121_p3, 1, 0 }
  0x35   : > { %s4127_s7 = scalar_select %p31_p2, %s3975_s23, %s33_s20  }
  0x36   : > { %s4130_s9 = sshll.u32 %s238_s8, 3  ;;  %s4563_s10 = sshll.u32 %s3979_s24, 7 }
  0x37   : > { %s4577_s0 = sld [smem:[#allocation18_spill]]  ;;  %s242_s14 = scalar_lea.vmem [#allocation4], %s4130_s9 }
  0x38   : > { %s249_s15 = sshll.u32 %s242_s14, 4  ;;  %p4143_p11 = pnand %p3611_p7, %p42_p9  ;;  %s4141_s15 = int_to_ptr.vmem [resolvable:$true] %s249_s15 }
  0x39   : > { %s4147_s17 = scalar_lea.sflag [#allocation5], %s238_s8 }
  0x3a   : > { %p3849_p0 = pneg %p4143_p11 }
  0x3d   : > { %s4138_s13 = scalar_lea.hbm %s4577_s0, %s4563_s10  ;;  %s3852_s11 = scalar_lea.hbm %s4577_s0, 256 }
  0x3e   : > { %s3847_s18 = scalar_lea.hbm %s4138_s13, 128  ;;  %p3853_p1 = scmp.lt.s32.totalorder %s4138_s13, %s4577_s0 }
  0x3f   : > { %p3848_p13 = scmp.ne.s32.totalorder %s4138_s13, %s3847_s18  ;;  %p3854_p2 = scmp.lt.s32.totalorder %s3852_s11, %s3847_s18 }
  0x41   : > { %p3850_p5 = pnand %p3849_p0, %p3848_p13  ;;  %p3855_p6 = por %p3854_p2, %p3853_p1 }
  0x43   : > { %p3851_p10 = pneg %p3850_p5 }
  0x45   : > { %p3856_p12 = pnand %p3855_p6, %p3851_p10 }
  0x47   : > { %3859 = shalt.err (!%p3856_p12)
}
  0x48   : > { %s3860_s8 = scalar_lea.vmem %s4141_s15, 128  ;;  %s3985_s20 = smov [#allocation4]  }
  0x49   : > { %p3861_p7 = scmp.ne.s32.totalorder %s4141_s15, %s3860_s8  ;;  %s3865_s26 = sshll.u32 %s3985_s20, 4  ;;  %s3866_s26 = int_to_ptr.vmem [resolvable:$false] %s3865_s26 }
  0x4a   : > { %s3867_s10 = scalar_lea.vmem %s3866_s26, 256  ;;  %p3868_p5 = scmp.lt.s32.totalorder %s4141_s15, %s3866_s26 }
  0x4b   : > { %p3863_p9 = pnand %p3861_p7, %p3849_p0  ;;  %p3869_p3 = scmp.lt.s32.totalorder %s3867_s10, %s3860_s8 }
  0x4d   : > { %p3864_p13 = pneg %p3863_p9  ;;  %p3870_p4 = por %p3869_p3, %p3868_p5 }
  0x4f   : > { %p3871_p1 = pnand %p3870_p4, %p3864_p13 }
  0x51   : > { %3874 = shalt.err (!%p3871_p1)
}
  0x52   : > { %s3986_s18 = smov 32   ;;  %s3987_s11 = smov 2  }
  0x53   : > { %3601 = dma.hbm_to_vmem [thread:$0]  (!%p4143_p11), %s4138_s13, 128, %s4141_s15, %s4147_s17, %s3986_s18, %s3986_s18, %s3987_s11  }
  0x54   : > { %s4579_s12 = sshll.u32 %s3979_s24, 7  ;;  %s263_s20 = scalar_lea.vmem [#allocation7], %s4130_s9 }
  0x55   : > { %s4182_s8 = scalar_lea.hbm %s4556_s1, %s4579_s12  ;;  %s270_s26 = sshll.u32 %s263_s20, 4  ;;  %s4185_s26 = int_to_ptr.vmem [resolvable:$true] %s270_s26 }
  0x56   : > { %s259_s0 = sand.u32 1, %s3979_s24   ;;  %s3875_s4 = scalar_lea.hbm %s4182_s8, 128 }
  0x57   : > { %s260_s2 = scalar_lea.sflag [#allocation8], %s259_s0  ;;  %p3876_p4 = scmp.ne.s32.totalorder %s4182_s8, %s3875_s4 }
  0x58   : > { %s3880_s17 = scalar_lea.hbm %s4556_s1, 256  ;;  %p3881_p2 = scmp.lt.s32.totalorder %s4182_s8, %s4556_s1 }
  0x59   : > { %p3878_p3 = pnand %p3876_p4, %p3849_p0  ;;  %p3882_p6 = scmp.lt.s32.totalorder %s3880_s17, %s3875_s4 }
  0x5b   : > { %p3879_p10 = pneg %p3878_p3  ;;  %p3883_p12 = por %p3882_p6, %p3881_p2 }
  0x5d   : > { %p3884_p7 = pnand %p3883_p12, %p3879_p10 }
  0x5f   : > { %3887 = shalt.err (!%p3884_p7)
}
  0x60   : > { %s3888_s0 = scalar_lea.vmem %s4185_s26, 128  ;;  %s3988_s9 = smov [#allocation7]  }
  0x61   : > { %p3889_p9 = scmp.ne.s32.totalorder %s4185_s26, %s3888_s0  ;;  %s3893_s14 = sshll.u32 %s3988_s9, 4  ;;  %s3894_s14 = int_to_ptr.vmem [resolvable:$false] %s3893_s14 }
  0x62   : > { %s3895_s20 = scalar_lea.vmem %s3894_s14, 256  ;;  %p3896_p1 = scmp.lt.s32.totalorder %s4185_s26, %s3894_s14 }
  0x63   : > { %p3891_p13 = pnand %p3889_p9, %p3849_p0  ;;  %p3897_p4 = scmp.lt.s32.totalorder %s3895_s20, %s3888_s0 }
  0x65   : > { %p3892_p5 = pneg %p3891_p13  ;;  %p3898_p3 = por %p3897_p4, %p3896_p1 }
  0x67   : > { %p3899_p2 = pnand %p3898_p3, %p3892_p5 }
  0x69   : > { %3902 = shalt.err (!%p3899_p2)
}
  0x6a   : > { %3604 = dma.hbm_to_vmem [thread:$0]  (!%p4143_p11), %s4182_s8, 128, %s4185_s26, %s260_s2, %s3986_s18, %s3986_s18, %s3987_s11  }
  0x6b   : > { %282 = sbr.rel (%p4079_p8) target bundleno = 949 (0x3b5), region = 44  ;;  %s4216_s4 = sand.u32 (!%p4079_p8), 1, %s3971_s22  }
  0x6c   : > { %s4219_s13 = sshll.u32 (!%p4079_p8), %s4216_s4, 3  ;;  %s285_s15 = scalar_lea.sflag (!%p4079_p8), [#allocation5], %s4216_s4 }
  0x6d   : > { %s4223_s16 = scalar_lea.vmem (!%p4079_p8), [#allocation4], %s4219_s13  ;;  %p4580_p0 = scmp.ne.s32.totalorder (!%p4079_p8), %s4569_s27, 0 }
  0x70   : > { %3946 = dma.done.wait (%p4580_p0), %s285_s15, 128  }
  0x71   : > { %3948 = vsyncadd (%p4580_p0), %s285_s15, 4294967168  ;;  %s293_s2 = sand.u32 1, %s4060_s25   ;;  %s297_s18 = scalar_lea.vmem [#allocation7], %s4219_s13 }
  0x72   : > { %s294_s29 = scalar_lea.sflag [#allocation8], %s293_s2 }
  0x73   : > { %3950 = dma.done.wait (%p4580_p0), %s294_s29, 128  }
  0x74   : > { %3952 = vsyncadd (%p4580_p0), %s294_s29, 4294967168  ;;  %p4581_p8 = scmp.eq.s32.totalorder %s4060_s25, 0 }
  0x76   : > { %3954 = dma.done.wait (%p4581_p8), [#allocation8], 4032   ;;  %p4582_p11 = pmov %p4581_p8 }
  0x77   : > { %p4583_p10 = pmov %p4581_p8 }
  0x78   : > { %3956 = vsyncadd (%p4582_p11), [#allocation8], 4294963264 }
  0x79   : > { %3958 = dma.done.wait (%p4583_p10), [#allocation11], 9216   ;;  %p4584_p6 = pmov %p4581_p8 }
  0x7a   : > { %vm340_vm0 = vcmask 452608   ;;  %v3989_v0 = vmov 0   ;;  %v3218_v1 = vld.sshfl [vmem:[%s297_s18 + $0x4] sm:$0x3 pattern:$0x76325410]  ;;  %v967_v34 = vlaneseq }
  0x7b   : > { %3960 = vsyncadd (%p4584_p6), [#allocation11], 4294958080  ;;  %341 = vst.msk [vmem:[#allocation2] sm:$0x7] %vm340_vm0, %v3989_v0  ;;  %s3990_s27 = smov 32   ;;  %v3671_v5 = vld [vmem:[#allocation9 + $0x78] sm:$0xff]  }
  0x7c   : > { %344 = vst.msk [vmem:[#allocation2 + $0xc] sm:$0x7] %vm340_vm0, %v3989_v0  ;;  %346 = vst.msk [vmem:[#allocation2 + $0x14] sm:$0x7] %vm340_vm0, %v3989_v0  ;;  %397 = vrot.lane.b32.xlu1 %v3218_v1, %s3990_s27  ;;  %v3672_v6 = vld [vmem:[#allocation9 + $0x38] sm:$0xff]   ;;  %v3673_v7 = vld [vmem:[#allocation9 + $0x70] sm:$0xff]   ;;  %3415 = vmatprep.subr.bf16.mxu0 %v3671_v5 }
  0x7d   : > { %342 = vst.msk [vmem:[#allocation2 + $0x4] sm:$0x7] %vm340_vm0, %v3989_v0  ;;  %343 = vst.msk [vmem:[#allocation2 + $0x8] sm:$0x7] %vm340_vm0, %v3989_v0  ;;  %vm1428_vm1 = vcmask 1043456   ;;  %v3678_v9 = vld [vmem:[#allocation9 + $0xb8] sm:$0xff]   ;;  %3416 = vmatpush3.bf16.msra.mxu0 %v3672_v6 }
  0x7e   : > { %345 = vst.msk [vmem:[#allocation2 + $0x10] sm:$0x7] %vm340_vm0, %v3989_v0  ;;  %347 = vst [vmem:[#allocation3] sm:$0x7] %v3989_v0  ;;  %v3676_v8 = vld [vmem:[#allocation9 + $0xf8] ss:$0 sps:$4 sm:$0xff]   ;;  %3417 = vmatprep.subr.bf16.mxu0 %v3673_v7 }
  0x7f   : > { %348 = vst [vmem:[#allocation3 + $0x4] sm:$0x7] %v3989_v0  ;;  %349 = vst [vmem:[#allocation3 + $0x8] sm:$0x7] %v3989_v0  ;;  %v3674_v10 = vld [vmem:[#allocation9 + $0x30] sm:$0xff]   ;;  %3576 = vmatprep.subr.msk.bf16.mxu1 %vm1428_vm1, %v3676_v8  ;;  %v3675_v12 = vld [vmem:[#allocation9 + $0x68] sm:$0xff]  }
  0x80   : > { %350 = vst [vmem:[#allocation3 + $0xc] sm:$0x7] %v3989_v0  ;;  %351 = vst [vmem:[#allocation3 + $0x10] sm:$0x7] %v3989_v0  ;;  %v3680_v11 = vld [vmem:[#allocation9 + $0xf0] sm:$0xff]   ;;  %3438 = vmatpush3.bf16.msra.mxu1 %v3678_v9  ;;  %v3677_v14 = vld [vmem:[#allocation9 + $0x28] sm:$0xff]  }
  0x81   : > { %352 = vst [vmem:[#allocation3 + $0x14] sm:$0x7] %v3989_v0  ;;  %v3216_v2 = vld.sshfl [vmem:[%s297_s18] sm:$0x3 pattern:$0x76325410]  ;;  %3439 = vmatprep.subr.bf16.mxu1 %v3680_v11  ;;  %3418 = vmatpush3.bf16.msra.mxu0 %v3674_v10 }
  0x82   : > { %393 = vrot.lane.b32.xlu0 %v3216_v2, %s3990_s27  ;;  %v3219_v3 = vld.sshfl [vmem:[%s297_s18 + $0x6] sm:$0x3 pattern:$0x76325410]  ;;  %v3684_v15 = vld [vmem:[#allocation9 + $0xe8] sm:$0xff]   ;;  %v3679_v16 = vld [vmem:[#allocation9 + $0x60] sm:$0xff]   ;;  %3419 = vmatprep.subr.bf16.mxu0 %v3675_v12 }
  0x83   : > { %v3217_v4 = vld.sshfl [vmem:[%s297_s18 + $0x2] sm:$0x3 pattern:$0x76325410]  ;;  %399 = vrot.lane.b32.xlu1 %v3219_v3, %s3990_s27  ;;  %v3686_v17 = vld [vmem:[#allocation9 + $0xa8] sm:$0xff]   ;;  %v3688_v18 = vld [vmem:[#allocation9 + $0xe0] sm:$0xff]  }
  0x84   : > { %v3682_v13 = vld [vmem:[#allocation9 + $0xb0] sm:$0xff]   ;;  %v3681_v19 = vld [vmem:[#allocation9 + $0x20] sm:$0xff]   ;;  %v3683_v20 = vld [vmem:[#allocation9 + $0x58] sm:$0xff]   ;;  %vm401_vm2 = vcmask 261120   ;;  %vm460_vm3 = vsmask.f32 2306 }
  0x85   : > { %3440 = vmatpush3.bf16.msra.mxu1 %v3682_v13  ;;  %3420 = vmatpush3.bf16.msra.mxu0 %v3677_v14  ;;  %v3685_v21 = vld [vmem:[#allocation9 + $0x18] sm:$0xff]   ;;  %v3687_v22 = vld [vmem:[#allocation9 + $0x50] sm:$0xff]   ;;  %v355_v23 = vld [vmem:[%s4223_s16 + $0x4] sm:$0x3]  ;;  %vm622_vm4 = vcmask 1040384   ;;  %vm623_vm5 = vcmask 1042434  }
  0x86   : > { %395 = vrot.lane.b32.xlu0 %v3217_v4, %s3990_s27  ;;  %3441 = vmatprep.subr.bf16.mxu1 %v3684_v15  ;;  %v353_v24 = vld [vmem:[%s4223_s16] sm:$0x3]  ;;  %v356_v30 = vld [vmem:[%s4223_s16 + $0x6] sm:$0x3]  ;;  %v354_v33 = vld [vmem:[%s4223_s16 + $0x2] sm:$0x3] }
  0x87   : > { %3421 = vmatprep.subr.bf16.mxu0 %v3679_v16  ;;  %v3224_v31 = vld.sshfl [vmem:[#allocation2] sm:$0x13 pattern:$0x76325410]  ;;  %vm4265_vm6 = vmand %vm340_vm0, %vm460_vm3  ;;  %v468_v48 = vld [vmem:[#allocation2 + $0xc] sm:$0x7] }
  0x88   : > { %v527_v40 = vshrl.u32 %v3224_v31, 16  ;;  %v530_v41 = vshll.u32 %v3224_v31, 16  ;;  %v4261_v46 = vld.sshfl [vmem:[#allocation2] sm:$0x12 pattern:$0x76325410]  ;;  %v494_v55 = vcombine.high %v3224_v31, %v3224_v31  ;;  %vm4277_vm9 = vmor %vm622_vm4, %vm623_vm5 }
  0x89   : > { %3442 = vmatpush3.bf16.msra.mxu1 %v3686_v17  ;;  %3422 = vmatpush3.bf16.msra.mxu0 %v3681_v19  ;;  %vm519_vm7 = vsmask.f32 1280  ;;  %v462_v53 = vld [vmem:[#allocation2 + $0x4] sm:$0x7]  ;;  %vm520_vm8 = vsmask.f32 3336  ;;  %v597_v63 = vcombine.high %v4261_v46, %v4261_v46 }
  0x8a   : > { %3443 = vmatprep.subr.bf16.mxu1 %v3688_v18  ;;  %3423 = vmatprep.subr.bf16.mxu0 %v3683_v20  ;;  %v529_v58 = vrot.slane %v527_v40, 6  ;;  %v532_v59 = vrot.slane %v530_v41, 7  ;;  %v3251_v0 = vld.sshfl [vmem:[#allocation2 + $0x14] sm:$0x13 pattern:$0x76325410]  ;;  %vm4283_vm11 = vmor %vm519_vm7, %vm520_vm8 }
  0x8b   : > { %v471_v2 = vld [vmem:[#allocation2 + $0x10] sm:$0x7]  ;;  %vm625_vm10 = vcmask 1044484   ;;  %v465_v7 = vld [vmem:[#allocation2 + $0x8] sm:$0x7]  ;;  %v845_v9 = vcombine.high %v3251_v0, %v3251_v0  ;;  %v536_v12 = vshll.u32 %v494_v55, 16 }
  0x8c   : > { %vm522_vm12 = vsmask.f32 5392  ;;  %v533_v11 = vor.u32 %v532_v59, %v529_v58  ;;  %v889_v13 = vshrl.u32 %v3251_v0, 16  ;;  %v3991_v15 = vmov 1983009808   ;;  %vm4292_vm13 = vmor %vm4277_vm9, %vm625_vm10  ;;  %v3692_v31 = vld [vmem:[#allocation9 + $0xd8] sm:$0xff]  }
  0x8d   : > { %3424 = vmatpush3.bf16.msra.mxu0 %v3685_v21  ;;  %v965_v16 = vunpack.c.l.s4 %v3991_v15  ;;  %v968_v17 = vshrl.u32 %v967_v34, 7  ;;  %vm627_vm14 = vcmask 1046534   ;;  %v3232_v20 = vrot.slane %v4261_v46, 9  ;;  %vm4302_vm15 = vmor %vm4283_vm11, %vm522_vm12  ;;  %s3992_s11 = smov 80   ;;  %s3993_s8 = smov 40  }
  0x8e   : > { %3425 = vmatprep.subr.bf16.mxu0 %v3687_v22  ;;  %v631_v21 = vrot.slane %v597_v63, 7  ;;  %vm524_vm0 = vsmask.f32 7448  ;;  %vm4315_vm1 = vmor %vm4292_vm13, %vm627_vm14  ;;  %s3994_s26 = smov 112   ;;  %s3995_s17 = smov 56   ;;  %vm1139_vm4 = vcmask 457728  }
  0x8f   : > { %v966_v34 = vunpack.c.0.s8 %v965_v16  ;;  %s3996_s12 = smov 96   ;;  %s3997_s10 = smov 24   ;;  %vm1147_vm5 = vcmask 326656   ;;  %vm1150_vm7 = vcmask 785408   ;;  %vm1154_vm8 = vcmask 195584  }
  0x90   : > { %s3998_s0 = smov 8   ;;  %s3999_s9 = smov 64   ;;  %vm1161_vm9 = vcmask 64512   ;;  %vm1164_vm10 = vcmask 523264   ;;  %vm1425_vm11 = vcmask 982016   ;;  %vm1157_vm12 = vcmask 654336  }
  0x91   : > { %v4329_v47 = vsub.s32 %v966_v34, %v968_v17  ;;  %vm1596_vm13 = vcmask 1042432   ;;  %s338_s2 = scalar_lea.vmem [#allocation12], %s4219_s13  ;;  %s3414_s18 = sshll.u32 %s4060_s25, 7 }
  0x92   : > { %vm4405_vm14 = vmand %vm1596_vm13, %vm460_vm3  ;;  %vm4001_vm3 = vmmov 0   ;;  %s3084_s29 = sshll.u32 %s338_s2, 4  ;;  %s4510_s13 = scalar_lea.hbm %s4561_s6, %s3414_s18  ;;  %s4505_s29 = int_to_ptr.vmem [resolvable:$true] %s3084_s29 }
  0x93   : > { %s3071_s25 = scalar_lea.sflag [#allocation6], %s4216_s4  ;;  %p4601_p7 = scmp.ne.s32.totalorder %s4576_s30, 0 }
  0xee   : > { %v398_v25 = vpop.permute.xlu1 %397 }
  0xef   : > { %v410_v26 = vsel %vm401_vm2, %v355_v23, %v398_v25  ;;  %v892_v23 = vshll.u32 %v3251_v0, 16  ;;  %v3689_v25 = vld [vmem:[#allocation9 + $0x10] sm:$0xff]   ;;  %v3695_v0 = vld [vmem:[#allocation9 + $0x40] sm:$0xff]  }
  0xf0   : > { %v3222_v28 = vcombine.low %v410_v26, %v410_v26  ;;  %v3690_v26 = vld [vmem:[#allocation9 + $0xa0] sm:$0xff]   ;;  %3426 = vmatpush3.bf16.msra.mxu0 %v3689_v25 }
  0xf1   : > { %3444 = vmatpush3.bf16.msra.mxu1 %v3690_v26  ;;  %v4319_v40 = vrot.slane %v892_v23, 7 }
  0xf2   : > { %v441_v35 = vshrl.u32 %v3222_v28, 16  ;;  %v444_v43 = vshll.u32 %v3222_v28, 16  ;;  %v534_v28 = vrot.slane %v533_v11, 2  ;;  %3445 = vmatprep.subr.bf16.mxu1 %v3692_v31 }
  0xf4   : > { %v394_v27 = vpop.permute.xlu0 %393  ;;  %v443_v42 = vrot.slane %v441_v35, 7  ;;  %v4310_v35 = vld.sshfl [vmem:[#allocation2 + $0x14] sm:$0x12 pattern:$0x76325410] }
  0xf5   : > { %v404_v29 = vsel %vm401_vm2, %v353_v24, %v394_v27  ;;  %v400_v36 = vpop.permute.xlu1 %399  ;;  %v4306_v24 = vshll.u32 %v845_v9, 16  ;;  %v3691_v27 = vld [vmem:[#allocation9 + $0x48] sm:$0xff]  }
  0xf6   : > { %v3220_v32 = vcombine.low %v404_v29, %v404_v29  ;;  %v413_v38 = vsel %vm401_vm2, %v356_v30, %v400_v36  ;;  %v446_v52 = vor.u32 %v444_v43, %v443_v42  ;;  %v538_v29 = vrot.slane %v536_v12, 7  ;;  %3427 = vmatprep.subr.bf16.mxu0 %v3691_v27  ;;  %v3698_v12 = vld [vmem:[#allocation9 + $0x90] sm:$0xff]  }
  0xf7   : > { %v3223_v44 = vcombine.low %v413_v38, %v413_v38  ;;  %v4308_v30 = vrot.slane %v889_v13, 6  ;;  %v900_v41 = vrot.slane %v4306_v24, 7 }
  0xf8   : > { %v427_v37 = vshrl.u32 %v3220_v32, 16  ;;  %v396_v39 = vpop.permute.xlu0 %395  ;;  %v430_v50 = vshll.u32 %v3220_v32, 16  ;;  %v469_v60 = vsel %vm4265_vm6, %v446_v52, %v468_v48  ;;  %v3693_v32 = vld [vmem:[#allocation9 + $0x8] sm:$0xff]  }
  0xf9   : > { %v407_v45 = vsel %vm401_vm2, %v354_v33, %v396_v39  ;;  %v448_v54 = vshrl.u32 %v3223_v44, 16  ;;  %v451_v62 = vshll.u32 %v3223_v44, 16  ;;  %470 = vst [vmem:[#allocation2 + $0xc] sm:$0x7] %v469_v60  ;;  %v3694_v33 = vld [vmem:[#allocation9 + $0x98] sm:$0xff]   ;;  %vm4325_vm2 = vmor %vm4302_vm15, %vm524_vm0  ;;  %3428 = vmatpush3.bf16.msra.mxu0 %v3693_v32 }
  0xfa   : > { %v429_v49 = vrot.slane %v427_v37, 7  ;;  %v3221_v51 = vcombine.low %v407_v45, %v407_v45  ;;  %3446 = vmatpush3.bf16.msra.mxu1 %v3694_v33  ;;  %3429 = vmatprep.subr.bf16.mxu0 %v3695_v0 }
  0xfb   : > { %v450_v61 = vrot.slane %v448_v54, 7 }
  0xfc   : > { %v432_v56 = vor.u32 %v430_v50, %v429_v49  ;;  %v434_v57 = vshrl.u32 %v3221_v51, 16  ;;  %v437_v4 = vshll.u32 %v3221_v51, 16  ;;  %v632_v50 = vsel %vm4315_vm1, %v3232_v20, %v631_v21 }
  0xfd   : > { %v453_v6 = vor.u32 %v451_v62, %v450_v61  ;;  %v941_v51 = vcombine.high %v4310_v35, %v4310_v35 }
  0xfe   : > { %v463_v1 = vsel %vm4265_vm6, %v432_v56, %v462_v53  ;;  %v436_v3 = vrot.slane %v434_v57, 7  ;;  %v4337_v56 = vsel %vm4325_vm2, %v534_v28, %v538_v29 }
  0xff   : > { %464 = vst [vmem:[#allocation2 + $0x4] sm:$0x7] %v463_v1  ;;  %v472_v14 = vsel %vm4265_vm6, %v453_v6, %v471_v2  ;;  %v3696_v1 = vld [vmem:[#allocation9 + $0xd0] sm:$0xff]   ;;  %v895_v6 = vor.u32 %v4319_v40, %v4308_v30 }
 0x100   : > { %v439_v10 = vor.u32 %v437_v4, %v436_v3  ;;  %473 = vst [vmem:[#allocation2 + $0x10] sm:$0x7] %v472_v14  ;;  %v3231_v37 = vld.sshfl [vmem:[#allocation2 + $0xc] sm:$0x12 pattern:$0x76325410]  ;;  %3447 = vmatprep.subr.bf16.mxu1 %v3696_v1 }
 0x101   : > { %v621_v42 = vcombine.high %v3231_v37, %v3231_v37  ;;  %v3235_v44 = vrot.slane %v3231_v37, 9  ;;  %v3238_v5 = vld.sshfl [vmem:[#allocation2 + $0xc] sm:$0x13 pattern:$0x76325410]  ;;  %3448 = vmatpush3.bf16.msra.mxu1 %v3698_v12 }
 0x102   : > { %v466_v19 = vsel %vm4265_vm6, %v439_v10, %v465_v7  ;;  %v3697_v7 = vld [vmem:[#allocation9] sm:$0xff]   ;;  %v680_v15 = vcombine.high %v3238_v5, %v3238_v5  ;;  %v718_v26 = vshrl.u32 %v3238_v5, 16  ;;  %v721_v30 = vshll.u32 %v3238_v5, 16 }
 0x103   : > { %467 = vst [vmem:[#allocation2 + $0x8] sm:$0x7] %v466_v19  ;;  %v643_v55 = vrot.slane %v621_v42, 7  ;;  %3430 = vmatpush3.bf16.msra.mxu0 %v3697_v7  ;;  %vm1143_vm6 = vcmask 916480  }
 0x104   : > { %v727_v40 = vshll.u32 %v680_v15, 16 }
 0x105   : > { %v4348_v10 = vsel %vm4315_vm1, %v3235_v44, %v643_v55 }
 0x106   : > { %v3229_v36 = vld.sshfl [vmem:[#allocation2 + $0x4] sm:$0x12 pattern:$0x76325410] }
 0x107   : > { %v605_v38 = vcombine.high %v3229_v36, %v3229_v36  ;;  %v3233_v43 = vrot.slane %v3229_v36, 9  ;;  %v3236_v46 = vld.sshfl [vmem:[#allocation2 + $0x4] sm:$0x13 pattern:$0x76325410]  ;;  %v720_v36 = vrot.slane %v718_v26, 6 }
 0x108   : > { %v3783_v48 = vld.sshfl [vmem:[#allocation2 + $0x10] sm:$0xf pattern:$0x76325410]  ;;  %v664_v58 = vcombine.high %v3236_v46, %v3236_v46  ;;  %v690_v59 = vshrl.u32 %v3236_v46, 16  ;;  %v693_v60 = vshll.u32 %v3236_v46, 16 }
 0x109   : > { %v3786_v53 = vld.sshfl [vmem:[#allocation2 + $0xc] sm:$0xf pattern:$0x76325410]  ;;  %v635_v54 = vrot.slane %v605_v38, 7  ;;  %v723_v38 = vrot.slane %v721_v30, 7 }
 0x10a   : > { %v3784_v49 = vld.sshfl [vmem:[#allocation2 + $0x8] sm:$0xf pattern:$0x76325410]  ;;  %v692_v16 = vrot.slane %v690_v59, 6  ;;  %v695_v17 = vrot.slane %v693_v60, 7 }
 0x10b   : > { %v3785_v52 = vld.sshfl [vmem:[#allocation2 + $0x4] sm:$0xf pattern:$0x76325410]  ;;  %v4341_v62 = vsel %vm4315_vm1, %v3233_v43, %v635_v54  ;;  %v1098_v2 = vcombine.low %v3784_v49, %v3783_v48  ;;  %v699_v19 = vshll.u32 %v664_v58, 16  ;;  %v896_v48 = vrot.slane %v895_v6, 2 }
 0x10c   : > { %v3230_v57 = vld.sshfl [vmem:[#allocation2 + $0x8] sm:$0x12 pattern:$0x76325410]  ;;  %v998_v4 = vcombine.low %v632_v50, %v4341_v62  ;;  %v1037_v8 = vcombine.low %v3785_v52, %v3786_v53  ;;  %v696_v23 = vor.u32 %v695_v17, %v692_v16  ;;  %v724_v52 = vor.u32 %v723_v38, %v720_v36 }
 0x10d   : > { %v613_v61 = vcombine.high %v3230_v57, %v3230_v57  ;;  %v3237_v63 = vld.sshfl [vmem:[#allocation2 + $0x8] sm:$0x13 pattern:$0x76325410]  ;;  %v3234_v3 = vrot.slane %v3230_v57, 9  ;;  %1099 = vrot.lane.b32.xlu0 %v1098_v2, %s3992_s11  ;;  %v701_v34 = vrot.slane %v699_v19, 7  ;;  %v901_v7 = vsel %vm4325_vm2, %v896_v48, %v900_v41 }
 0x10e   : > { %v672_v11 = vcombine.high %v3237_v63, %v3237_v63  ;;  %v1006_v13 = vrot.slane %v998_v4, %v4329_v47  ;;  %v3239_v14 = vld.sshfl [vmem:[#allocation2 + $0x10] sm:$0x13 pattern:$0x76325410]  ;;  %1038 = vrot.lane.b32.xlu1 %v1037_v8, %s3993_s8  ;;  %v704_v20 = vshrl.u32 %v3237_v63, 16  ;;  %v707_v21 = vshll.u32 %v3237_v63, 16 }
 0x10f   : > { %v639_v9 = vrot.slane %v613_v61, 7  ;;  %v688_v27 = vcombine.high %v3239_v14, %v3239_v14  ;;  %v3243_v31 = vld.sshfl [vmem:[#allocation2 + $0x10] sm:$0x12 pattern:$0x76325410]  ;;  %v697_v33 = vrot.slane %v696_v23, 2 }
 0x110   : > { %v713_v25 = vshll.u32 %v672_v11, 16  ;;  %v706_v28 = vrot.slane %v704_v20, 6  ;;  %v709_v29 = vrot.slane %v707_v21, 7  ;;  %v732_v42 = vshrl.u32 %v3239_v14, 16  ;;  %v3702_v4 = vld [vmem:[#allocation9 + $0x88] sm:$0xff]  }
 0x111   : > { %v4353_v18 = vsel %vm4315_vm1, %v3234_v3, %v639_v9  ;;  %v735_v46 = vshll.u32 %v3239_v14, 16  ;;  %v702_v49 = vsel %vm4325_vm2, %v697_v33, %v701_v34  ;;  %v741_v55 = vshll.u32 %v688_v27, 16  ;;  %v3701_v3 = vld [vmem:[#allocation9 + $0xc8] sm:$0xff]  }
 0x112   : > { %v999_v22 = vcombine.low %v4353_v18, %v4348_v10  ;;  %v710_v37 = vor.u32 %v709_v29, %v706_v28  ;;  %v715_v44 = vrot.slane %v713_v25, 7  ;;  %v734_v53 = vrot.slane %v732_v42, 6  ;;  %3449 = vmatprep.subr.bf16.mxu1 %v3701_v3  ;;  %v3788_v33 = vld.sshfl [vmem:[#allocation2] sm:$0xf pattern:$0x76325410] }
 0x113   : > { %v737_v54 = vrot.slane %v735_v46, 7  ;;  %v784_v57 = vcombine.high %v3243_v31, %v3243_v31  ;;  %v725_v59 = vrot.slane %v724_v52, 2  ;;  %v729_v60 = vrot.slane %v727_v40, 7  ;;  %3450 = vmatpush3.bf16.msra.mxu1 %v3702_v4  ;;  %v3715_v3 = vld [vmem:[#allocation10 + $0xe0] sm:$0xff]   ;;  %v3716_v4 = vld [vmem:[#allocation10 + $0x68] sm:$0xff]  }
 0x114   : > { %v4358_v32 = vrot.slane %v999_v22, %v4329_v47  ;;  %v711_v50 = vrot.slane %v710_v37, 2  ;;  %v3259_v61 = vrot.slane %v4310_v35, 9  ;;  %v979_v0 = vcombine.low %v4337_v56, %v702_v49  ;;  %v3703_v35 = vld [vmem:[#allocation9 + $0xc0] sm:$0xff]  }
 0x115   : > { %v738_v63 = vor.u32 %v737_v54, %v734_v53  ;;  %v799_v1 = vrot.slane %v784_v57, 7  ;;  %v956_v2 = vrot.slane %v941_v51, 7  ;;  %v730_v5 = vsel %vm4325_vm2, %v725_v59, %v729_v60  ;;  %3451 = vmatprep.subr.bf16.mxu1 %v3703_v35  ;;  %v3706_v57 = vld [vmem:[#allocation10 + $0xb8] sm:$0xff]   ;;  %v3709_v60 = vld [vmem:[#allocation10 + $0xb0] sm:$0xff]  }
 0x116   : > { %v1014_v43 = vcombine.low %v1006_v13, %v4358_v32  ;;  %v716_v58 = vsel %vm4325_vm2, %v711_v50, %v715_v44  ;;  %v3247_v8 = vrot.slane %v3243_v31, 9  ;;  %v743_v11 = vrot.slane %v741_v55, 7  ;;  %v3704_v13 = vld [vmem:[#allocation9 + $0x80] sm:$0xff]   ;;  %v3705_v55 = vld [vmem:[#allocation10 + $0xf8] sm:$0xff]   ;;  %v3725_v35 = vld [vmem:[#allocation10 + $0x90] sm:$0xff]  }
 0x117   : > { %v1040_v6 = vcombine.low %v702_v49, %v716_v58  ;;  %v739_v9 = vrot.slane %v738_v63, 2  ;;  %v980_v56 = vcombine.low %v716_v58, %v730_v5  ;;  %v1059_v12 = vcombine.low %v4341_v62, %v4353_v18  ;;  %3452 = vmatpush3.bf16.msra.mxu1 %v3704_v13  ;;  %v3787_v31 = vld.sshfl [vmem:[#allocation2 + $0x8] sm:$0xf pattern:$0x76325410]  ;;  %v3707_v58 = vld [vmem:[#allocation10 + $0xf0] sm:$0xff]  }
 0x118   : > { %1015 = vrot.lane.b32.xlu0 %v1014_v43, %s3994_s26  ;;  %v800_v51 = vsel %vm4315_vm1, %v3247_v8, %v799_v1  ;;  %v987_v14 = vrot.slane %v979_v0, %v4329_v47  ;;  %v957_v21 = vsel %vm4315_vm1, %v3259_v61, %v956_v2  ;;  %v978_v37 = vcombine.low %v3788_v33, %v3787_v31  ;;  %v3708_v59 = vld [vmem:[#allocation10 + $0x78] sm:$0xff]   ;;  %v3711_v63 = vld [vmem:[#allocation10 + $0xe8] sm:$0xff]   ;;  %v3712_v0 = vld [vmem:[#allocation10 + $0x70] sm:$0xff]   ;;  %s3903_s26 = scalar_lea.vmem %s4505_s29, 128 }
 0x119   : > { %v744_v24 = vsel %vm4325_vm2, %v739_v9, %v743_v11  ;;  %v994_v41 = vrot.slane %v980_v56, %v4329_v47  ;;  %v1060_v15 = vcombine.low %v4348_v10, %v800_v51  ;;  %v1048_v62 = vrot.slane %v1040_v6, %v4329_v47  ;;  %3481 = vmatprep.subr.bf16.mxu1 %v3705_v55  ;;  %v3710_v61 = vld [vmem:[#allocation10 + $0x38] sm:$0xff]   ;;  %v3713_v1 = vld [vmem:[#allocation10 + $0xa8] sm:$0xff]   ;;  %v3714_v2 = vld [vmem:[#allocation10 + $0x30] sm:$0xff]   ;;  %p3904_p12 = scmp.ne.s32.totalorder %s4505_s29, %s3903_s26 }
 0x11a   : > { %v1041_v16 = vcombine.low %v730_v5, %v744_v24  ;;  %v1102_v17 = vcombine.low %v744_v24, %v901_v7  ;;  %v1067_v19 = vrot.slane %v1059_v12, %v4329_v47  ;;  %v1121_v25 = vcombine.low %v800_v51, %v957_v21  ;;  %3459 = vmatprep.subr.bf16.mxu0 %v3708_v59  ;;  %v3717_v5 = vld [vmem:[#allocation10 + $0xa0] sm:$0xff]   ;;  %v3718_v6 = vld [vmem:[#allocation10 + $0x28] sm:$0xff]   ;;  %v3719_v7 = vld [vmem:[#allocation10 + $0xd8] sm:$0xff]  }
 0x11b   : > { %v995_v18 = vcombine.low %v987_v14, %v994_v41  ;;  %v1074_v20 = vrot.slane %v1060_v15, %v4329_v47  ;;  %v3720_v8 = vld [vmem:[#allocation10 + $0x60] sm:$0xff]   ;;  %v3721_v9 = vld [vmem:[#allocation10 + $0x98] sm:$0xff]   ;;  %v3723_v56 = vld [vmem:[#allocation10 + $0xd0] sm:$0xff]   ;;  %p3905_p9 = pnand %p3904_p12, %p4601_p7 }
 0x11c   : > { %v1055_v22 = vrot.slane %v1041_v16, %v4329_v47  ;;  %v1116_v10 = vrot.slane %v1102_v17, %v4329_v47  ;;  %v1135_v28 = vrot.slane %v1121_v25, %v4329_v47  ;;  %v3722_v11 = vld [vmem:[#allocation10 + $0x20] sm:$0xff]   ;;  %v3724_v12 = vld [vmem:[#allocation10 + $0x58] sm:$0xff]   ;;  %v3727_v13 = vld [vmem:[#allocation10 + $0xc8] sm:$0xff]  }
 0x11d   : > { %996 = vrot.lane.b32.xlu0 %v995_v18, %s3995_s17  ;;  %v1075_v26 = vcombine.low %v1067_v19, %v1074_v20  ;;  %v3726_v51 = vld [vmem:[#allocation10 + $0x18] sm:$0xff]   ;;  %v3728_v24 = vld [vmem:[#allocation10 + $0x50] sm:$0xff]   ;;  %v3729_v14 = vld [vmem:[#allocation10 + $0x88] sm:$0xff]   ;;  %p3906_p13 = pneg %p3905_p9  ;;  %s4002_s17 = smov [#allocation12]  }
 0x11e   : > { %v1056_v23 = vcombine.low %v1048_v62, %v1055_v22  ;;  %v1117_v27 = vcombine.low %v994_v41, %v1116_v10  ;;  %v1136_v29 = vcombine.low %v4358_v32, %v1135_v28  ;;  %v3730_v41 = vld [vmem:[#allocation10 + $0x10] sm:$0xff]   ;;  %v3731_v15 = vld [vmem:[#allocation10 + $0xc0] sm:$0xff]   ;;  %v3734_v16 = vld [vmem:[#allocation10 + $0x48] sm:$0xff]  }
 0x11f   : > { %v3735_v62 = vld [vmem:[#allocation10 + $0x80] sm:$0xff]   ;;  %v3736_v17 = vld [vmem:[#allocation10 + $0x8] sm:$0xff]   ;;  %v3737_v18 = vld [vmem:[#allocation10 + $0x1f8] sm:$0xff]  }
 0x120   : > { %1057 = vrot.lane.b32.xlu1 %v1056_v23, %s3996_s12  ;;  %v3738_v19 = vld [vmem:[#allocation10 + $0x40] sm:$0xff]   ;;  %v3742_v21 = vld [vmem:[#allocation10 + $0x178] sm:$0xff]   ;;  %v3260_v28 = vld [vmem:[%s4558_s3] ss:$0 sm:$0xff]  ;;  %s3907_s12 = sshll.u32 %s4002_s17, 4  ;;  %s3908_s12 = int_to_ptr.vmem [resolvable:$false] %s3907_s12 }
 0x121   : > { %1076 = vrot.lane.b32.xlu0 %v1075_v26, %s3997_s10  ;;  %v3740_v20 = vld [vmem:[#allocation10] sm:$0xff]   ;;  %s3909_s10 = scalar_lea.vmem %s3908_s12, 256  ;;  %p3910_p5 = scmp.lt.s32.totalorder %s4505_s29, %s3908_s12 }
 0x122   : > { %p3911_p1 = scmp.lt.s32.totalorder %s3909_s10, %s3903_s26 }
 0x124   : > { %1118 = vrot.lane.b32.xlu1 %v1117_v27, %s3998_s0  ;;  %p3912_p4 = por %p3911_p1, %p3910_p5 }
 0x126   : > { %p3913_p3 = pnand %p3912_p4, %p3906_p13 }
 0x128   : > { %1137 = vrot.lane.b32.xlu1 %v1136_v29, %s3999_s9 }
 0x17f   : > { %v1100_v30 = vpop.permute.xlu0 %1099 }
 0x180   : > { %v1039_v36 = vpop.permute.xlu1 %1038 }
 0x18a   : > { %v1016_v34 = vpop.permute.xlu0 %1015 }
 0x18b   : > { %v1149_v42 = vsel %vm1147_vm5, %v1016_v34, %v1039_v36 }
 0x18f   : > { %v997_v38 = vpop.permute.xlu0 %996 }
 0x190   : > { %v1142_v40 = vsel %vm1139_vm4, %v978_v37, %v997_v38 }
 0x191   : > { %v1145_v44 = vsel %vm1143_vm6, %v1142_v40, %v1016_v34 }
 0x192   : > { %v1058_v43 = vpop.permute.xlu1 %1057 }
 0x193   : > { %v1152_v46 = vsel %vm1150_vm7, %v1149_v42, %v1058_v43  ;;  %v1077_v48 = vpop.permute.xlu0 %1076 }
 0x194   : > { %1464 = vmatprep.mubr.bf16.mxu0 %v1152_v46  ;;  %v1156_v49 = vsel %vm1154_vm8, %v1058_v43, %v1077_v48  ;;  %v3295_v48 = vld.sshfl [vmem:[#allocation3] sm:$0x13 pattern:$0x76325410] }
 0x195   : > { %1465 = vmatmul.mubr.bf16.vlgmr.msra.gmra.mxu0 %v1145_v44  ;;  %v1159_v54 = vsel %vm1157_vm12, %v1156_v49, %v1100_v30  ;;  %v1659_v59 = vshll.u32 %v3295_v48, 16 }
 0x196   : > { %v1119_v32 = vpop.permute.xlu1 %1118  ;;  %3460 = vmatpush3.bf16.msra.mxu0 %v3710_v61 }
 0x197   : > { %v1163_v50 = vsel %vm1161_vm9, %v1100_v30, %v1119_v32  ;;  %3461 = vmatprep.subr.bf16.mxu0 %v3712_v0  ;;  %v1630_v0 = vcombine.high %v3295_v48, %v3295_v48 }
 0x19a   : > { %v1138_v52 = vpop.permute.xlu1 %1137  ;;  %3462 = vmatpush3.bf16.msra.mxu0 %v3714_v2 }
 0x19b   : > { %v1166_v53 = vsel %vm1164_vm10, %v1163_v50, %v1138_v52  ;;  %3463 = vmatprep.subr.bf16.mxu0 %v3716_v4  ;;  %v1656_v52 = vshrl.u32 %v3295_v48, 16 }
 0x19c   : > { %3293 = vmatprep.mubr.msk.bf16.mxu1 %vm1425_vm11, %v1166_v53 }
 0x19d   : > { %1506 = vmatmul.mubr.bf16.vlgmr.msra.gmra.mxu1 %v1159_v54  ;;  %v1658_v2 = vrot.slane %v1656_v52, 6 }
 0x19e   : > { %3482 = vmatpush3.bf16.msra.mxu1 %v3706_v57  ;;  %3464 = vmatpush3.bf16.msra.mxu0 %v3718_v6 }
 0x19f   : > { %3483 = vmatprep.subr.bf16.mxu1 %v3707_v58  ;;  %3465 = vmatprep.subr.bf16.mxu0 %v3720_v8  ;;  %v3322_v58 = vld.sshfl [vmem:[#allocation3 + $0x14] sm:$0x13 pattern:$0x76325410] }
 0x1a0   : > { %v2014_v4 = vshll.u32 %v3322_v58, 16 }
 0x1a2   : > { %3484 = vmatpush3.bf16.msra.mxu1 %v3709_v60  ;;  %3466 = vmatpush3.bf16.msra.mxu0 %v3722_v11 }
 0x1a3   : > { %3485 = vmatprep.subr.bf16.mxu1 %v3711_v63  ;;  %3467 = vmatprep.subr.bf16.mxu0 %v3724_v12 }
 0x1a6   : > { %3486 = vmatpush3.bf16.msra.mxu1 %v3713_v1  ;;  %3468 = vmatpush3.bf16.msra.mxu0 %v3726_v51  ;;  %v1601_v51 = vld [vmem:[#allocation3 + $0x8] sm:$0x7] }
 0x1a7   : > { %3487 = vmatprep.subr.bf16.mxu1 %v3715_v3  ;;  %3469 = vmatprep.subr.bf16.mxu0 %v3728_v24  ;;  %v2011_v3 = vshrl.u32 %v3322_v58, 16  ;;  %v1661_v24 = vrot.slane %v1659_v59, 7 }
 0x1aa   : > { %3488 = vmatpush3.bf16.msra.mxu1 %v3717_v5  ;;  %3470 = vmatpush3.bf16.msra.mxu0 %v3730_v41 }
 0x1ab   : > { %3489 = vmatprep.subr.bf16.mxu1 %v3719_v7  ;;  %3471 = vmatprep.subr.bf16.mxu0 %v3734_v16 }
 0x1ae   : > { %3490 = vmatpush3.bf16.msra.mxu1 %v3721_v9  ;;  %3472 = vmatpush3.bf16.msra.mxu0 %v3736_v17  ;;  %v1598_v9 = vld [vmem:[#allocation3 + $0x4] sm:$0x7] }
 0x1af   : > { %3491 = vmatprep.subr.bf16.mxu1 %v3723_v56  ;;  %3473 = vmatprep.subr.bf16.mxu0 %v3738_v19  ;;  %v1967_v19 = vcombine.high %v3322_v58, %v3322_v58 }
 0x1b2   : > { %3492 = vmatpush3.bf16.msra.mxu1 %v3725_v35  ;;  %3474 = vmatpush3.bf16.msra.mxu0 %v3740_v20  ;;  %v2013_v20 = vrot.slane %v2011_v3, 6 }
 0x1b3   : > { %3493 = vmatprep.subr.bf16.mxu1 %v3727_v13  ;;  %3503 = vmatprep.subr.bf16.mxu0 %v3742_v21  ;;  %v1604_v13 = vld [vmem:[#allocation3 + $0xc] sm:$0x7]  ;;  %v2016_v21 = vrot.slane %v2014_v4, 7 }
 0x1b6   : > { %3494 = vmatpush3.bf16.msra.mxu1 %v3729_v14 }
 0x1b7   : > { %3495 = vmatprep.subr.bf16.mxu1 %v3731_v15 }
 0x1ba   : > { %3496 = vmatpush3.bf16.msra.mxu1 %v3735_v62  ;;  %v1607_v62 = vld [vmem:[#allocation3 + $0x10] sm:$0x7] }
 0x1bb   : > { %3525 = vmatprep.subr.bf16.mxu1 %v3737_v18  ;;  %v3299_v18 = vld.sshfl [vmem:[#allocation3] sm:$0x12 pattern:$0x76325410] }
 0x255   : > { %v3431_v22 = vpop.f32.mrf.mxu0 }
 0x257   : > { %v3432_v23 = vpop.f32.mrf.mxu0 }
 0x258   : > { %v3433_v27 = vadd.f32 %v3432_v23, %v3431_v22 }
 0x259   : > { %v3434_v10 = vpop.f32.mrf.mxu0 }
 0x25a   : > { %v1467_v34 = vadd.f32 %v3433_v27, %v3260_v28 }
 0x25b   : > { %v3435_v25 = vpop.f32.mrf.mxu0 }
 0x25c   : > { %v3436_v30 = vadd.f32 %v3435_v25, %v3434_v10 }
 0x25d   : > { %v3453_v26 = vpop.f32.mrf.mxu1 }
 0x25e   : > { %v1470_v37 = vadd.f32 %v3436_v30, %v3260_v28  ;;  %v1726_v28 = vcombine.high %v3299_v18, %v3299_v18  ;;  %v4417_v30 = vshll.u32 %v1630_v0, 16 }
 0x25f   : > { %v3454_v29 = vpop.f32.mrf.mxu1 }
 0x260   : > { %v3455_v31 = vadd.f32 %v3454_v29, %v3453_v26  ;;  %v1662_v29 = vor.u32 %v1661_v24, %v1658_v2 }
 0x261   : > { %v3456_v33 = vpop.f32.mrf.mxu1 }
 0x262   : > { %v1508_v38 = vadd.f32 %v3455_v31, %v1467_v34  ;;  %v2017_v31 = vor.u32 %v2016_v21, %v2013_v20  ;;  %v3303_v34 = vrot.slane %v3299_v18, 9 }
 0x263   : > { %v3457_v36 = vpop.f32.mrf.mxu1 }
 0x264   : > { %v3458_v40 = vadd.f32 %v3457_v36, %v3456_v33  ;;  %v1514_v43 = vmax.f32 %v1508_v38, 0.0  ;;  %v4419_v33 = vshll.u32 %v1967_v19, 16  ;;  %v1753_v36 = vrot.slane %v1726_v28, 7  ;;  %v3739_v19 = vld [vmem:[#allocation10 + $0x1b8] sm:$0xff]  }
 0x265   : > { %v1667_v38 = vrot.slane %v4417_v30, 7 }
 0x266   : > { %v1511_v42 = vadd.f32 %v3458_v40, %v1470_v37  ;;  %v1663_v37 = vrot.slane %v1662_v29, 2  ;;  %v4422_v40 = vrot.slane %v2017_v31, 2  ;;  %v1754_v52 = vsel %vm4315_vm1, %v3303_v34, %v1753_v36 }
 0x268   : > { %v1515_v44 = vmax.f32 %v1511_v42, 0.0  ;;  %v2022_v42 = vrot.slane %v4419_v33, 7  ;;  %v1668_v36 = vsel %vm4325_vm2, %v1663_v37, %v1667_v38 }
 0x26a   : > { %v1516_v46 = vpack.c.bf16 %v1515_v44, %v1514_v43  ;;  %v3294_v32 = vpack.c.bf16 %v1515_v44, %v1515_v44 }
 0x26c   : > { %v1525_v49 = vrot.slane %v1516_v46, %v4329_v47  ;;  %v1532_v50 = vrot.slane %v3294_v32, %v4329_v47 }
 0x26e   : > { %v1533_v53 = vcombine.high %v1525_v49, %v1525_v49  ;;  %v1534_v54 = vcombine.high %v1532_v50, %v1532_v50  ;;  %v1541_v55 = vrot.slane %v1525_v49, %v4329_v47  ;;  %v1555_v57 = vrot.slane %v1532_v50, %v4329_v47 }
 0x270   : > { %v1548_v60 = vrot.slane %v1533_v53, %v4329_v47  ;;  %v1562_v61 = vrot.slane %v1534_v54, %v4329_v47  ;;  %v1564_v63 = vshrl.u32 %v1541_v55, 16  ;;  %v1578_v1 = vshrl.u32 %v1555_v57, 16 }
 0x271   : > { %v1567_v6 = vshll.u32 %v1541_v55, 16  ;;  %v1581_v35 = vshll.u32 %v1555_v57, 16 }
 0x272   : > { %v1566_v5 = vrot.slane %v1564_v63, 7  ;;  %v1571_v7 = vshrl.u32 %v1548_v60, 16  ;;  %v1585_v8 = vshrl.u32 %v1562_v61, 16  ;;  %v1574_v56 = vshll.u32 %v1548_v60, 16 }
 0x273   : > { %v1580_v12 = vrot.slane %v1578_v1, 7  ;;  %v1588_v16 = vshll.u32 %v1562_v61, 16 }
 0x274   : > { %v1569_v14 = vor.u32 %v1567_v6, %v1566_v5  ;;  %v1573_v41 = vrot.slane %v1571_v7, 7  ;;  %v1587_v15 = vrot.slane %v1585_v8, 7 }
 0x275   : > { %v1583_v17 = vor.u32 %v1581_v35, %v1580_v12 }
 0x276   : > { %v1576_v22 = vor.u32 %v1574_v56, %v1573_v41  ;;  %v1590_v23 = vor.u32 %v1588_v16, %v1587_v15  ;;  %v1599_v10 = vsel %vm4405_vm14, %v1569_v14, %v1598_v9 }
 0x277   : > { %1600 = vst [vmem:[#allocation3 + $0x4] sm:$0x7] %v1599_v10  ;;  %v1605_v25 = vsel %vm4405_vm14, %v1583_v17, %v1604_v13 }
 0x278   : > { %v1602_v26 = vsel %vm4405_vm14, %v1576_v22, %v1601_v51  ;;  %1606 = vst [vmem:[#allocation3 + $0xc] sm:$0x7] %v1605_v25  ;;  %v1608_v27 = vsel %vm4405_vm14, %v1590_v23, %v1607_v62  ;;  %v3741_v25 = vld [vmem:[#allocation10 + $0x1f0] sm:$0xff]  }
 0x279   : > { %1603 = vst [vmem:[#allocation3 + $0x8] sm:$0x7] %v1602_v26  ;;  %1609 = vst [vmem:[#allocation3 + $0x10] sm:$0x7] %v1608_v27 }
 0x27e   : > { %v3300_v43 = vld.sshfl [vmem:[#allocation3 + $0x4] sm:$0x12 pattern:$0x76325410] }
 0x27f   : > { %v3302_v44 = vld.sshfl [vmem:[#allocation3 + $0xc] sm:$0x12 pattern:$0x76325410]  ;;  %v1734_v46 = vcombine.high %v3300_v43, %v3300_v43  ;;  %v3304_v54 = vrot.slane %v3300_v43, 9 }
 0x280   : > { %v3789_v32 = vld.sshfl [vmem:[#allocation3 + $0x4] sm:$0xf pattern:$0x76325410]  ;;  %v1750_v48 = vcombine.high %v3302_v44, %v3302_v44  ;;  %v3306_v59 = vrot.slane %v3302_v44, 9 }
 0x281   : > { %v3790_v49 = vld.sshfl [vmem:[#allocation3 + $0xc] sm:$0xf pattern:$0x76325410]  ;;  %v1757_v55 = vrot.slane %v1734_v46, 7 }
 0x282   : > { %v3301_v50 = vld.sshfl [vmem:[#allocation3 + $0x8] sm:$0x12 pattern:$0x76325410]  ;;  %v1765_v60 = vrot.slane %v1750_v48, 7  ;;  %v2158_v3 = vcombine.low %v3789_v32, %v3790_v49 }
 0x283   : > { %v1742_v53 = vcombine.high %v3301_v50, %v3301_v50  ;;  %v3296_v57 = vld.sshfl [vmem:[#allocation3 + $0x4] sm:$0x13 pattern:$0x76325410]  ;;  %v3305_v58 = vrot.slane %v3301_v50, 9  ;;  %v4429_v61 = vsel %vm4315_vm1, %v3304_v54, %v1757_v55 }
 0x284   : > { %v3297_v0 = vld.sshfl [vmem:[#allocation3 + $0x8] sm:$0x13 pattern:$0x76325410]  ;;  %v1638_v1 = vcombine.high %v3296_v57, %v3296_v57  ;;  %v1670_v2 = vshrl.u32 %v3296_v57, 16  ;;  %v2120_v4 = vcombine.low %v1754_v52, %v4429_v61  ;;  %v4438_v8 = vsel %vm4315_vm1, %v3306_v59, %v1765_v60  ;;  %2909 = vmatprep.mubr.bf16.mxu1 %v2158_v3 }
 0x285   : > { %v1761_v63 = vrot.slane %v1742_v53, 7  ;;  %v3298_v5 = vld.sshfl [vmem:[#allocation3 + $0xc] sm:$0x13 pattern:$0x76325410]  ;;  %v1646_v6 = vcombine.high %v3297_v0, %v3297_v0  ;;  %v1673_v11 = vshll.u32 %v3296_v57, 16 }
 0x286   : > { %v1672_v9 = vrot.slane %v1670_v2, 6  ;;  %v3321_v56 = vld.sshfl [vmem:[#allocation3 + $0x10] sm:$0x13 pattern:$0x76325410]  ;;  %v1654_v35 = vcombine.high %v3298_v5, %v3298_v5  ;;  %v1679_v51 = vshll.u32 %v1638_v1, 16  ;;  %v2128_v24 = vrot.slane %v2120_v4, %v4329_v47 }
 0x287   : > { %v4434_v7 = vsel %vm4315_vm1, %v3305_v58, %v1761_v63  ;;  %v1684_v13 = vshrl.u32 %v3297_v0, 16  ;;  %v1675_v14 = vrot.slane %v1673_v11, 7  ;;  %v1687_v41 = vshll.u32 %v3297_v0, 16  ;;  %v3743_v50 = vld [vmem:[#allocation10 + $0x1b0] sm:$0xff]   ;;  %v3747_v58 = vld [vmem:[#allocation10 + $0x1e8] sm:$0xff]  }
 0x288   : > { %v2121_v12 = vcombine.low %v4434_v7, %v4438_v8  ;;  %v1698_v15 = vshrl.u32 %v3298_v5, 16  ;;  %v1693_v17 = vshll.u32 %v1646_v6, 16  ;;  %v1701_v18 = vshll.u32 %v3298_v5, 16  ;;  %v3749_v11 = vld [vmem:[#allocation10 + $0x1a8] sm:$0xff]  }
 0x289   : > { %v1686_v62 = vrot.slane %v1684_v13, 6  ;;  %v1676_v20 = vor.u32 %v1675_v14, %v1672_v9  ;;  %v1681_v21 = vrot.slane %v1679_v51, 7  ;;  %v1689_v22 = vrot.slane %v1687_v41, 7  ;;  %v3746_v13 = vld [vmem:[#allocation10 + $0x138] sm:$0xff]  }
 0x28a   : > { %v4444_v16 = vrot.slane %v2121_v12, %v4329_v47  ;;  %v1700_v23 = vrot.slane %v1698_v15, 6  ;;  %v1703_v26 = vrot.slane %v1701_v18, 7  ;;  %v1707_v27 = vshll.u32 %v1654_v35, 16  ;;  %v3748_v15 = vld [vmem:[#allocation10 + $0x170] sm:$0xff]  }
 0x28b   : > { %v1959_v28 = vcombine.high %v3321_v56, %v3321_v56  ;;  %v1677_v29 = vrot.slane %v1676_v20, 2  ;;  %v1690_v30 = vor.u32 %v1689_v22, %v1686_v62  ;;  %v1997_v31 = vshrl.u32 %v3321_v56, 16  ;;  %v3314_v32 = vld.sshfl [vmem:[#allocation3 + $0x10] sm:$0x12 pattern:$0x76325410] }
 0x28c   : > { %v2136_v10 = vcombine.low %v2128_v24, %v4444_v16  ;;  %v2000_v34 = vshll.u32 %v3321_v56, 16  ;;  %v1695_v43 = vrot.slane %v1693_v17, 7  ;;  %v1704_v44 = vor.u32 %v1703_v26, %v1700_v23  ;;  %v3791_v57 = vld.sshfl [vmem:[#allocation3 + $0x8] sm:$0xf pattern:$0x76325410] }
 0x28d   : > { %v2006_v46 = vshll.u32 %v1959_v28, 16  ;;  %v4451_v48 = vsel %vm4325_vm2, %v1677_v29, %v1681_v21  ;;  %v1691_v49 = vrot.slane %v1690_v30, 2  ;;  %v1999_v52 = vrot.slane %v1997_v31, 6  ;;  %v3751_v56 = vld [vmem:[#allocation10 + $0x1e0] sm:$0xff]   ;;  %v3755_v62 = vld [vmem:[#allocation10 + $0x1d8] sm:$0xff]   ;;  %v3752_v20 = vld [vmem:[#allocation10 + $0x168] sm:$0xff]  }
 0x28e   : > { %2910 = vmatmul.mubr.bf16.vlgmr.msra.gmra.mxu1 %v2136_v10  ;;  %v2002_v53 = vrot.slane %v2000_v34, 7  ;;  %v1705_v54 = vrot.slane %v1704_v44, 2  ;;  %v1709_v55 = vrot.slane %v1707_v27, 7  ;;  %v2102_v38 = vcombine.low %v1668_v36, %v4451_v48  ;;  %v3753_v24 = vld [vmem:[#allocation10 + $0x1a0] sm:$0xff]   ;;  %v3759_v21 = vld [vmem:[#allocation10 + $0x1d0] sm:$0xff]   ;;  %v3754_v22 = vld [vmem:[#allocation10 + $0x128] sm:$0xff]  }
 0x28f   : > { %3526 = vmatpush3.bf16.msra.mxu1 %v3739_v19  ;;  %v4455_v37 = vsel %vm4325_vm2, %v1691_v49, %v1695_v43  ;;  %v1906_v60 = vcombine.high %v3314_v32, %v3314_v32  ;;  %v2008_v0 = vrot.slane %v2006_v46, 7  ;;  %v2023_v1 = vsel %vm4325_vm2, %v4422_v40, %v2022_v42  ;;  %v3792_v2 = vld.sshfl [vmem:[#allocation3] sm:$0xf pattern:$0x76325410]  ;;  %v3757_v19 = vld [vmem:[#allocation10 + $0x198] sm:$0xff]  }
 0x290   : > { %3527 = vmatprep.subr.bf16.mxu1 %v3741_v25  ;;  %v2003_v59 = vor.u32 %v2002_v53, %v1999_v52  ;;  %v4460_v63 = vsel %vm4325_vm2, %v1705_v54, %v1709_v55  ;;  %v2178_v3 = vcombine.low %v4429_v61, %v4434_v7  ;;  %v3318_v6 = vrot.slane %v3314_v32, 9  ;;  %v3761_v23 = vld [vmem:[#allocation10 + $0x190] sm:$0xff]   ;;  %v3756_v10 = vld [vmem:[#allocation10 + $0x160] sm:$0xff]   ;;  %v3763_v25 = vld [vmem:[#allocation10 + $0x1c8] sm:$0xff]  }
 0x291   : > { %v2103_v4 = vcombine.low %v4455_v37, %v4460_v63  ;;  %v1921_v9 = vrot.slane %v1906_v60, 7  ;;  %v2110_v33 = vrot.slane %v2102_v38, %v4329_v47  ;;  %v2100_v45 = vcombine.low %v3792_v2, %v3791_v57  ;;  %v3758_v26 = vld [vmem:[#allocation10 + $0x120] sm:$0xff]   ;;  %v3760_v27 = vld [vmem:[#allocation10 + $0x158] sm:$0xff]   ;;  %v3765_v28 = vld [vmem:[#allocation10 + $0x188] sm:$0xff]  }
 0x292   : > { %v2004_v5 = vrot.slane %v2003_v59, 2  ;;  %v2186_v35 = vrot.slane %v2178_v3, %v4329_v47  ;;  %v3767_v29 = vld [vmem:[#allocation10 + $0x1c0] sm:$0xff]   ;;  %v3793_v30 = vld.sshfl [vmem:[#allocation3 + $0x8] sm:$0xf pattern:$0x76325410]  ;;  %v2160_v52 = vcombine.low %v4451_v48, %v4455_v37 }
 0x293   : > { %3528 = vmatpush3.bf16.msra.mxu1 %v3743_v50  ;;  %v2117_v12 = vrot.slane %v2103_v4, %v4329_v47  ;;  %v4479_v42 = vsel %vm4315_vm1, %v3318_v6, %v1921_v9  ;;  %v3794_v31 = vld.sshfl [vmem:[#allocation3 + $0x10] sm:$0xf pattern:$0x76325410]  ;;  %v3764_v43 = vld [vmem:[#allocation10 + $0x150] sm:$0xff]   ;;  %v3768_v46 = vld [vmem:[#allocation10 + $0x148] sm:$0xff]  }
 0x294   : > { %3529 = vmatprep.subr.bf16.mxu1 %v3747_v58  ;;  %v4475_v40 = vsel %vm4325_vm2, %v2004_v5, %v2008_v0  ;;  %v2179_v7 = vcombine.low %v4438_v8, %v4479_v42  ;;  %v3750_v8 = vld [vmem:[#allocation10 + $0x130] sm:$0xff]   ;;  %v3762_v34 = vld [vmem:[#allocation10 + $0x118] sm:$0xff]   ;;  %v3769_v36 = vld [vmem:[#allocation10 + $0x180] sm:$0xff]   ;;  %v2216_v32 = vcombine.low %v3793_v30, %v3794_v31  ;;  %v2168_v55 = vrot.slane %v2160_v52, %v4329_v47 }
 0x295   : > { %v2219_v61 = vcombine.low %v4475_v40, %v2023_v1  ;;  %v2118_v51 = vcombine.low %v2110_v33, %v2117_v12  ;;  %v3766_v44 = vld [vmem:[#allocation10 + $0x110] sm:$0xff]   ;;  %v3770_v49 = vld [vmem:[#allocation10 + $0x108] sm:$0xff]   ;;  %v3773_v50 = vld [vmem:[#allocation10 + $0x140] sm:$0xff]   ;;  %v2161_v53 = vcombine.low %v4460_v63, %v4475_v40  ;;  %v4000_v59 = vmov 0.0  }
 0x296   : > { %v2193_v41 = vrot.slane %v2179_v7, %v4329_v47  ;;  %v3774_v54 = vld [vmem:[#allocation10 + $0x100] sm:$0xff]   ;;  %v3775_v58 = vld [vmem:[#allocation10 + $0x238] sm:$0xff]   ;;  %v3776_v60 = vld [vmem:[#allocation10 + $0x230] sm:$0xff]  }
 0x297   : > { %3530 = vmatpush3.bf16.msra.mxu1 %v3749_v11  ;;  %v2233_v14 = vrot.slane %v2219_v61, %v4329_v47  ;;  %2868 = vmatprep.mubr.bf16.mxu0 %v2118_v51  ;;  %v2175_v57 = vrot.slane %v2161_v53, %v4329_v47  ;;  %v3777_v48 = vld [vmem:[#allocation10 + $0x228] sm:$0xff]   ;;  %v3326_v37 = vld.sshfl [vmem:[#allocation3 + $0x14] sm:$0x12 pattern:$0x76325410]  ;;  %v3779_v1 = vld [vmem:[#allocation10 + $0x218] sm:$0xff]  }
 0x298   : > { %3531 = vmatprep.subr.bf16.mxu1 %v3751_v56  ;;  %2869 = vmatmul.mubr.bf16.vlgmr.msra.gmra.mxu0 %v2100_v45  ;;  %v2194_v18 = vcombine.low %v2186_v35, %v2193_v41  ;;  %v3778_v63 = vld [vmem:[#allocation10 + $0x220] sm:$0xff]   ;;  %v2063_v0 = vcombine.high %v3326_v37, %v3326_v37  ;;  %v3330_v2 = vrot.slane %v3326_v37, 9  ;;  %v3780_v4 = vld [vmem:[#allocation10 + $0x210] sm:$0xff]   ;;  %v3781_v6 = vld [vmem:[#allocation10 + $0x208] sm:$0xff]  }
 0x299   : > { %v2234_v17 = vcombine.low %v2117_v12, %v2233_v14  ;;  %3504 = vmatpush3.bf16.msra.mxu0 %v3746_v13  ;;  %v2176_v38 = vcombine.low %v2168_v55, %v2175_v57  ;;  %v3782_v11 = vld [vmem:[#allocation10 + $0x200] sm:$0xff]   ;;  %v3331_v41 = vld [vmem:[%s4560_s5] ss:$0 sm:$0xff] }
 0x29a   : > { %2950 = vmatprep.mubr.bf16.mxu0 %v2194_v18  ;;  %3505 = vmatprep.subr.bf16.mxu0 %v3748_v15  ;;  %v2078_v3 = vrot.slane %v2063_v0, 7 }
 0x29b   : > { %3532 = vmatpush3.bf16.msra.mxu1 %v3753_v24  ;;  %2991 = vmatprep.mubr.bf16.mxu1 %v2234_v17 }
 0x29c   : > { %3533 = vmatprep.subr.bf16.mxu1 %v3755_v62  ;;  %v2079_v5 = vsel %vm4315_vm1, %v3330_v2, %v2078_v3 }
 0x29d   : > { %3506 = vmatpush3.bf16.msra.mxu0 %v3750_v8  ;;  %v2237_v9 = vcombine.low %v4479_v42, %v2079_v5 }
 0x29e   : > { %3507 = vmatprep.subr.bf16.mxu0 %v3752_v20 }
 0x29f   : > { %3534 = vmatpush3.bf16.msra.mxu1 %v3757_v19  ;;  %v2251_v56 = vrot.slane %v2237_v9, %v4329_v47 }
 0x2a0   : > { %3535 = vmatprep.subr.bf16.mxu1 %v3759_v21 }
 0x2a1   : > { %3508 = vmatpush3.bf16.msra.mxu0 %v3754_v22  ;;  %v2252_v33 = vcombine.low %v4444_v16, %v2251_v56 }
 0x2a2   : > { %3509 = vmatprep.subr.bf16.mxu0 %v3756_v10 }
 0x2a3   : > { %3536 = vmatpush3.bf16.msra.mxu1 %v3761_v23 }
 0x2a4   : > { %3537 = vmatprep.subr.bf16.mxu1 %v3763_v25 }
 0x2a5   : > { %3510 = vmatpush3.bf16.msra.mxu0 %v3758_v26 }
 0x2a6   : > { %3511 = vmatprep.subr.bf16.mxu0 %v3760_v27 }
 0x2a7   : > { %3538 = vmatpush3.bf16.msra.mxu1 %v3765_v28 }
 0x2a8   : > { %3539 = vmatprep.subr.bf16.mxu1 %v3767_v29 }
 0x2a9   : > { %3512 = vmatpush3.bf16.msra.mxu0 %v3762_v34 }
 0x2aa   : > { %3513 = vmatprep.subr.bf16.mxu0 %v3764_v43 }
 0x2ab   : > { %3540 = vmatpush3.bf16.msra.mxu1 %v3769_v36 }
 0x2ad   : > { %3514 = vmatpush3.bf16.msra.mxu0 %v3766_v44 }
 0x2ae   : > { %2992 = vmatmul.mubr.bf16.vlgmr.msra.gmra.mxu1 %v2216_v32  ;;  %3515 = vmatprep.subr.bf16.mxu0 %v3768_v46 }
 0x2b1   : > { %3516 = vmatpush3.bf16.msra.mxu0 %v3770_v49 }
 0x2b2   : > { %3517 = vmatprep.subr.bf16.mxu0 %v3773_v50 }
 0x2b5   : > { %3518 = vmatpush3.bf16.msra.mxu0 %v3774_v54 }
 0x2b6   : > { %3556 = vmatprep.subr.bf16.mxu0 %v4000_v59 }
 0x2b8   : > { %2951 = vmatmul.mubr.bf16.vlgmr.msra.gmra.mxu0 %v2176_v38 }
 0x2b9   : > { %3557 = vmatpush3.bf16.msra.mxu0 %v3775_v58  ;;  %3572 = vmatprep.mubr.msk.bf16.mxu0 %vm4001_vm3, %v4000_v59 }
 0x2ba   : > { %3558 = vmatprep.subr.bf16.mxu0 %v4000_v59 }
 0x2bd   : > { %3559 = vmatpush3.bf16.msra.mxu0 %v3776_v60 }
 0x2be   : > { %3560 = vmatprep.subr.bf16.mxu0 %v4000_v59 }
 0x2c1   : > { %3561 = vmatpush3.bf16.msra.mxu0 %v3777_v48 }
 0x2c2   : > { %3562 = vmatprep.subr.bf16.mxu0 %v4000_v59 }
 0x2c5   : > { %3563 = vmatpush3.bf16.msra.mxu0 %v3778_v63 }
 0x2c6   : > { %3564 = vmatprep.subr.bf16.mxu0 %v4000_v59 }
 0x2c9   : > { %3565 = vmatpush3.bf16.msra.mxu0 %v3779_v1 }
 0x2ca   : > { %3566 = vmatprep.subr.bf16.mxu0 %v4000_v59 }
 0x2cd   : > { %3567 = vmatpush3.bf16.msra.mxu0 %v3780_v4 }
 0x2ce   : > { %3568 = vmatprep.subr.bf16.mxu0 %v4000_v59 }
 0x2d1   : > { %3569 = vmatpush3.bf16.msra.mxu0 %v3781_v6 }
 0x2d2   : > { %3570 = vmatprep.subr.bf16.mxu0 %v4000_v59 }
 0x2d5   : > { %3571 = vmatpush3.bf16.msra.mxu0 %v3782_v11 }
 0x2d8   : > { %3573 = vmatmul.mubr.bf16.vlgmr.msra.gmra.mxu0 %v2252_v33 }
 0x34e   : > { %v3497_v61 = vpop.f32.mrf.mxu1 }
 0x350   : > { %v3498_v39 = vpop.f32.mrf.mxu1 }
 0x351   : > { %v3499_v8 = vadd.f32 %v3498_v39, %v3497_v61 }
 0x352   : > { %v3500_v51 = vpop.f32.mrf.mxu1 }
 0x354   : > { %v3501_v24 = vpop.f32.mrf.mxu1 }
 0x355   : > { %v3502_v22 = vadd.f32 %v3501_v24, %v3500_v51 }
 0x358   : > { %v3475_v12 = vpop.f32.mrf.mxu0 }
 0x35a   : > { %v3476_v40 = vpop.f32.mrf.mxu0 }
 0x35b   : > { %v3477_v45 = vadd.f32 %v3476_v40, %v3475_v12 }
 0x35c   : > { %v3478_v7 = vpop.f32.mrf.mxu0 }
 0x35d   : > { %v2871_v17 = vadd.f32 %v3477_v45, %v3331_v41 }
 0x35e   : > { %v3479_v35 = vpop.f32.mrf.mxu0 }
 0x35f   : > { %v3480_v62 = vadd.f32 %v3479_v35, %v3478_v7  ;;  %v2912_v23 = vadd.f32 %v3499_v8, %v2871_v17 }
 0x361   : > { %v2874_v19 = vadd.f32 %v3480_v62, %v3331_v41 }
 0x363   : > { %v2915_v26 = vadd.f32 %v3502_v22, %v2874_v19 }
 0x36e   : > { %v3541_v42 = vpop.f32.mrf.mxu1 }
 0x370   : > { %v3542_v16 = vpop.f32.mrf.mxu1 }
 0x371   : > { %v3543_v28 = vadd.f32 %v3542_v16, %v3541_v42 }
 0x372   : > { %v3544_v21 = vpop.f32.mrf.mxu1 }
 0x374   : > { %v3545_v27 = vpop.f32.mrf.mxu1 }
 0x375   : > { %v3546_v31 = vadd.f32 %v3545_v27, %v3544_v21 }
 0x378   : > { %v3519_v13 = vpop.f32.mrf.mxu0 }
 0x37a   : > { %v3520_v14 = vpop.f32.mrf.mxu0 }
 0x37b   : > { %v3521_v20 = vadd.f32 %v3520_v14, %v3519_v13 }
 0x37c   : > { %v3522_v15 = vpop.f32.mrf.mxu0 }
 0x37d   : > { %v2953_v25 = vadd.f32 %v3521_v20, %v2912_v23 }
 0x37e   : > { %v3523_v18 = vpop.f32.mrf.mxu0 }
 0x37f   : > { %v3524_v10 = vadd.f32 %v3523_v18, %v3522_v15  ;;  %v2994_v34 = vadd.f32 %v3543_v28, %v2953_v25 }
 0x381   : > { %v2956_v29 = vadd.f32 %v3524_v10, %v2915_v26 }
 0x383   : > { %v2997_v44 = vadd.f32 %v3546_v31, %v2956_v29 }
 0x398   : > { %v3034_v30 = vpop.f32.mrf.mxu0 }
 0x399   : > { %v3035_v43 = vadd.f32 %v3034_v30, %v2994_v34 }
 0x39a   : > { %v3574_v36 = vpop.f32.mrf.mxu0 }
 0x39b   : > { %v3041_v50 = vmax.f32 %v3035_v43, 0.0 }
 0x39c   : > { %v3037_v46 = vpop.f32.mrf.mxu0 }
 0x39d   : > { %v3038_v32 = vadd.f32 %v3037_v46, %v2997_v44 }
 0x39e   : > { %v3575_v49 = vpop.f32.mrf.mxu0 }
 0x39f   : > { %v3042_v52 = vmax.f32 %v3038_v32, 0.0 }
 0x3a1   : > { %v3043_v53 = vpack.c.bf16 %v3042_v52, %v3041_v50  ;;  %v3404_v54 = vpack.c.bf16 %v3042_v52, %v3042_v52 }
 0x3a3   : > { %v3052_v55 = vrot.slane %v3043_v53, %v4329_v47  ;;  %v3059_v57 = vrot.slane %v3404_v54, %v4329_v47  ;;  %3405 = vst.sshfl [vmem:[%s338_s2] sm:$0x3 pattern:$0x76325410] %v3043_v53 }
 0x3a4   : > { %3406 = vst.sshfl [vmem:[%s338_s2 + $0x4] sm:$0x3 pattern:$0x76325410] %v3404_v54 }
 0x3a5   : > { %v3060_v58 = vcombine.high %v3052_v55, %v3052_v55  ;;  %v3061_v38 = vcombine.high %v3059_v57, %v3059_v57 }
 0x3a7   : > { %3067 = vst [vmem:[%s338_s2 + $0x2] sm:$0x3] %v3060_v58  ;;  %3069 = vst [vmem:[%s338_s2 + $0x6] sm:$0x3] %v3061_v38 }
 0x3a8   : > { %3916 = shalt.err (!%p3913_p3)
}
 0x3a9   : > { %s3917_s0 = scalar_lea.hbm %s4510_s13, 128  ;;  %s3921_s20 = scalar_lea.hbm %s4561_s6, 256 }
 0x3aa   : > { %p3918_p2 = scmp.ne.s32.totalorder %s4510_s13, %s3917_s0  ;;  %p3922_p11 = scmp.lt.s32.totalorder %s4510_s13, %s4561_s6 }
 0x3ab   : > { %p3923_p10 = scmp.lt.s32.totalorder %s3921_s20, %s3917_s0 }
 0x3ac   : > { %p3919_p0 = pnand %p3918_p2, %p4601_p7 }
 0x3ad   : > { %p3924_p6 = por %p3923_p10, %p3922_p11 }
 0x3ae   : > { %p3920_p8 = pneg %p3919_p0 }
 0x3b0   : > { %p3925_p12 = pnand %p3924_p6, %p3920_p8 }
 0x3b2   : > { %3928 = shalt.err (!%p3925_p12)
}
 0x3b3   : > { %s4003_s2 = smov 2  }
 0x3b4   : > { %3589 = dma.vmem_to_hbm [thread:$0]  (%p4601_p7), %s4505_s29, 128, %s4510_s13, %s3071_s25, %s3990_s27, %s3990_s27, %s4003_s2  }
 0x3b5 PF: > { %s3099_s18 = sand.u32 1, %s3967_s21   ;;  %p4602_p9 = scmp.ne.s32.totalorder %s4570_s28, 0 }
 0x3b6   : > { %p4603_p13 = scmp.ge.s32.totalorder %s3979_s24, 2  ;;  %s3100_s11 = scalar_lea.sflag [#allocation6], %s3099_s18 }
 0x3b8   : > { %p3606_p5 = pnand %p4603_p13, %p4602_p9 }
 0x3ba   : > { %p3607_p1 = pneg %p3606_p5 }
 0x3bc   : > { %3962 = dma.done.wait (%p3607_p1), %s3100_s11, 128  }
 0x3bd   : > { %3964 = vsyncadd (%p3607_p1), %s3100_s11, 4294967168  ;;  %p23_p4 = scmp.ge.s32.totalorder %s4111_s19, 4   ;;  %s4604_s21 = smov %s3971_s22 }
 0x3be   : > { %s4605_s22 = smov %s3975_s23  ;;  %s4606_s23 = smov %s4127_s7 }
 0x3bf   : > { %s4607_s24 = smov %s4111_s19  ;;  %25 = sbr.rel (!%p23_p4) target bundleno = 12 (0xc), region = 114 }
 0x3c4   :  { %3105 = vsyncpa [#allocation5], 1 }
 0x3c5   :  { %3107 = vsyncpa [#allocation5 + $0x1], 1 }
 0x3c6   :  { %3108 = vsyncpa [#allocation8], 1 }
 0x3c7   :  { %3110 = vsyncpa [#allocation8 + $0x1], 1 }
 0x3c8   :  { %3111 = vsyncpa [#allocation11], 1 }
 0x3c9   :  { %3112 = vsyncpa [#allocation6], 1 }
 0x3ca   :  { %3114 = vsyncpa [#allocation6 + $0x1], 1 }

</bundles_post_ra>
